<compile_context>
chip_gen: v7x
topology: tpu7x:2x2x1
jax: 0.10.0
libtpu: 0.0.40
codegen_flags: <defaults>
</compile_context>

<pallas_src>
import math

import jax
import jax.numpy as jnp
from jax import lax
from jax.experimental import pallas as pl
from jax.experimental.pallas import tpu as pltpu


def _mlp_kernel(x_ref, w1_ref, b1_ref, w2_ref, b2_ref, o_ref, acc_ref):
    # x_ref:  (tm, C_in)     w1_ref: (C_in, th)   b1_ref: (1, th)
    # w2_ref: (th, C_out)    b2_ref: (1, C_out)   o_ref:  (tm, C_out)
    # acc_ref: (tm, C_out) f32 scratch, resident across the H-chunk axis.
    h_idx = pl.program_id(1)

    @pl.when(h_idx == 0)
    def _():
        acc_ref[...] = jnp.zeros_like(acc_ref)

    # fc1 chunk: native-dtype operands on the MXU, f32 accumulation.
    h = jnp.dot(x_ref[...], w1_ref[...], preferred_element_type=jnp.float32)
    h = h + b1_ref[...].astype(jnp.float32)

    # act: exact GELU (erf-based), matching PyTorch nn.GELU() default.
    h = 0.5 * h * (1.0 + lax.erf(h * jnp.float32(0.7071067811865476)))

    # drop1 (p=0.0) -> identity; norm (norm_layer=None) -> identity.

    # Partial fc2: cast back to the weight dtype so bf16 weights hit the bf16 MXU path,
    # accumulate this H-chunk's contribution in f32.
    acc_ref[...] += jnp.dot(
        h.astype(w2_ref.dtype), w2_ref[...], preferred_element_type=jnp.float32
    )

    @pl.when(h_idx == pl.num_programs(1) - 1)
    def _():
        # drop2 (p=0.0) -> identity.
        o_ref[...] = (acc_ref[...] + b2_ref[...].astype(jnp.float32)).astype(o_ref.dtype)


def _round_up(a, b):
    return ((a + b - 1) // b) * b


def _tpu_vmem_capacity_bytes():
    try:
        return int(pltpu.get_tpu_info().vmem_capacity_bytes)
    except Exception:
        return 64 << 20  # conservative fallback (v7x per-TC VMEM)


def _pick_hidden_chunk(H):
    """H-chunk width: keep H resident when small, otherwise stream in 128..1024-wide panels."""
    if H <= 1024:
        return H
    for c in (1024, 512, 256, 128):
        if H % c == 0:
            return c
    return H  # TODO(synk): pad the hidden dim for H with no 128-multiple divisor.


def mlp_pallas(x, w1, b1, w2, b2, *, tm=None, th=None):
    """Mlp forward. x: (B, N, C_in) -> (B, N, C_out).

    w1: (C_in, H), b1: (H,), w2: (H, C_out), b2: (C_out,) -- weights stored transposed
    relative to nn.Linear so the kernel computes x @ w directly.
    tm: row tile (multiple of 8; 256/512 feed the MXU best). th: hidden-dim chunk width.
    """
    B, N, C_in = x.shape
    H = w1.shape[1]
    C_out = w2.shape[1]
    M = B * N

    x2 = x.reshape(M, C_in)
    b1_2 = b1.reshape(1, H)
    b2_2 = b2.reshape(1, C_out)

    vmem_cap = _tpu_vmem_capacity_bytes()

    if tm is None:
        # Bigger row tiles on 128 MiB parts (v5e/v6e); 256 on 64 MiB-per-TC parts (v7x).
        tm = 512 if vmem_cap >= (96 << 20) else 256
    tm = _round_up(max(8, min(tm, _round_up(M, 8))), 8)

    if th is None:
        th = _pick_hidden_chunk(H)
    if H % th != 0:
        th = H  # fall back to a single resident chunk rather than a partial hidden block
    grid_h = H // th
    grid_m = pl.cdiv(M, tm)  # partial last block handled by Pallas masking (no host pad)

    isz = lambda a: jnp.dtype(a.dtype).itemsize

    # VMEM budget (conservative: assumes double-buffered streamed weight chunks).
    vmem_est = (
        2 * tm * C_in * isz(x)            # x tile (double-buffered)
        + 2 * tm * C_out * isz(x)         # output tile
        + 2 * (C_in * th + th) * isz(w1)  # w1 + b1 chunk
        + 2 * th * C_out * isz(w2)        # w2 chunk
        + C_out * isz(w2)                 # b2 (resident, single buffer)
        + tm * C_out * 4                  # f32 accumulator scratch
        + tm * th * 4                     # f32 fc1 intermediate
        + tm * th * 4                     # GELU temporaries
        + tm * th * isz(w2)               # cast of h for the fc2 MXU pass
    )
    vmem_limit = int(min(max(vmem_est * 1.25 + (4 << 20), 16 << 20), 0.85 * vmem_cap))

    cost = pl.CostEstimate(
        flops=2 * M * C_in * H + 2 * M * H * C_out,
        transcendentals=M * H,
        bytes_accessed=(
            M * (C_in + C_out) * isz(x)
            + (C_in * H + H) * isz(w1)
            + (H * C_out + C_out) * isz(w2)
        ),
    )

    out_shape = jax.ShapeDtypeStruct((M, C_out), x.dtype)

    def build(resident_mode):
        # Single-buffer the operands whose block index never changes across the grid.
        w_mode = resident_mode if grid_h == 1 else None
        return pl.pallas_call(
            _mlp_kernel,
            out_shape=out_shape,
            grid_spec=pltpu.PrefetchScalarGridSpec(
                num_scalar_prefetch=0,
                grid=(grid_m, grid_h),
                in_specs=[
                    pl.BlockSpec((tm, C_in), lambda i, h: (i, 0)),
                    pl.BlockSpec((C_in, th), lambda i, h: (0, h), pipeline_mode=w_mode),
                    pl.BlockSpec((1, th), lambda i, h: (0, h), pipeline_mode=w_mode),
                    pl.BlockSpec((th, C_out), lambda i, h: (h, 0), pipeline_mode=w_mode),
                    pl.BlockSpec((1, C_out), lambda i, h: (0, 0), pipeline_mode=resident_mode),
                ],
                out_specs=pl.BlockSpec((tm, C_out), lambda i, h: (i, 0)),
                scratch_shapes=[pltpu.VMEM((tm, C_out), jnp.float32)],
            ),
            compiler_params=pltpu.CompilerParams(
                dimension_semantics=("parallel", "arbitrary"),
                vmem_limit_bytes=vmem_limit,
            ),
            cost_estimate=cost,
        )

    try:
        out2 = build(pl.Buffered(1))(x2, w1, b1_2, w2, b2_2)
    except Exception:
        # Fallback if single-buffered pipeline_mode is unsupported on this jax version.
        out2 = build(None)(x2, w1, b1_2, w2, b2_2)

    return out2.reshape(B, N, C_out)


def mlp_reference(x, w1, b1, w2, b2):
    h = jnp.einsum("bnc,ch->bnh", x, w1) + b1
    h = 0.5 * h * (1.0 + lax.erf(h / jnp.sqrt(2.0)))
    return jnp.einsum("bnh,ho->bno", h, w2) + b2


if __name__ == "__main__":
    key = jax.random.PRNGKey(0)
    B, N = 2, 64            # batch, tokens
    C_in = 128              # in_features   (lane-dense: multiple of 128)
    H = 256                 # hidden_features
    C_out = 128             # out_features (defaults to in_features)

    kx, k1, kb1, k2, kb2 = jax.random.split(key, 5)
    x = jax.random.normal(kx, (B, N, C_in), dtype=jnp.float32)

    # Weights stored transposed vs nn.Linear so the kernel computes x @ w directly.
    w1 = jax.random.normal(k1, (C_in, H), dtype=jnp.float32) * (1.0 / math.sqrt(C_in))
    b1 = jax.random.normal(kb1, (H,), dtype=jnp.float32) * 0.02
    w2 = jax.random.normal(k2, (H, C_out), dtype=jnp.float32) * (1.0 / math.sqrt(H))
    b2 = jax.random.normal(kb2, (C_out,), dtype=jnp.float32) * 0.02

    ref = mlp_reference(x, w1, b1, w2, b2)

    # 1) f32 path, single H chunk (resident, single-buffered weights).
    out = jax.block_until_ready(mlp_pallas(x, w1, b1, w2, b2))
    assert out.shape == (B, N, C_out)
    assert jnp.allclose(out, ref, atol=1e-4, rtol=1e-4), "f32 mismatch vs reference"

    # 2) H-chunked accumulation (grid over hidden dim) + ragged M (partial last row block, no pad).
    x_r = x[:, :50]
    ref_r = mlp_reference(x_r, w1, b1, w2, b2)
    out_r = jax.block_until_ready(mlp_pallas(x_r, w1, b1, w2, b2, tm=64, th=128))
    assert out_r.shape == (B, 50, C_out)
    assert jnp.allclose(out_r, ref_r, atol=1e-4, rtol=1e-4), "H-chunk / ragged-M mismatch"

    # 3) bf16 inference path: operands pre-cast once outside the kernel, f32 accumulation inside.
    bf = lambda a: a.astype(jnp.bfloat16)
    out_bf = jax.block_until_ready(mlp_pallas(bf(x), bf(w1), bf(b1), bf(w2), bf(b2)))
    assert jnp.allclose(out_bf.astype(jnp.float32), ref, atol=1e-1, rtol=1e-1), \
        "bf16 mismatch vs reference"

    print("KERNEL_OK")
</pallas_src>

<mosaic_0001>
module attributes {stable_mosaic.version = 11 : i64} {
  func.func @_mlp_kernel(%arg0: i32, %arg1: i32, %arg2: memref<128x128xf32, #tpu.memory_space<vmem>>, %arg3: memref<128x256xf32, #tpu.memory_space<vmem>>, %arg4: memref<1x256xf32, #tpu.memory_space<vmem>>, %arg5: memref<256x128xf32, #tpu.memory_space<vmem>>, %arg6: memref<1x128xf32, #tpu.memory_space<vmem>>, %arg7: memref<128x128xf32, #tpu.memory_space<vmem>>, %arg8: memref<128x128xf32, #tpu.memory_space<vmem>>) attributes {dimension_semantics = [#tpu.dimension_semantics<parallel>, #tpu.dimension_semantics<arbitrary>], iteration_bounds = array<i64: 1, 1>, scalar_prefetch = 0 : i64, scratch_operands = 1 : i64, tpu.core_type = #tpu.core_type<tc>, window_params = [{transform_indices = @transform_0, window_bounds = array<i64: 128, 128>}, {pipeline_mode = #tpu.pipeline_mode<synchronous>, transform_indices = @transform_1, window_bounds = array<i64: 128, 256>}, {pipeline_mode = #tpu.pipeline_mode<synchronous>, transform_indices = @transform_2, window_bounds = array<i64: 1, 256>}, {pipeline_mode = #tpu.pipeline_mode<synchronous>, transform_indices = @transform_3, window_bounds = array<i64: 256, 128>}, {pipeline_mode = #tpu.pipeline_mode<synchronous>, transform_indices = @transform_4, window_bounds = array<i64: 1, 128>}, {transform_indices = @transform_5, window_bounds = array<i64: 128, 128>}]} {
    %c0_i32 = arith.constant 0 : i32
    %0 = arith.cmpi eq, %arg1, %c0_i32 : i32
    %1 = arith.extui %0 : i1 to i32
    %c0_i32_0 = arith.constant 0 : i32
    %2 = arith.cmpi ne, %1, %c0_i32_0 : i32
    scf.if %2 {
      %cst_18 = arith.constant 0.000000e+00 : f32
      %25 = vector.broadcast %cst_18 : f32 to vector<128x128xf32>
      %c0_19 = arith.constant 0 : index
      %c0_20 = arith.constant 0 : index
      %26 = vector.load %arg8[%c0_19, %c0_20] : memref<128x128xf32, #tpu.memory_space<vmem>>, vector<128x128xf32>
      tpu.vector_store %arg8[%c0_19, %c0_20], %25 {strides = array<i32>} : memref<128x128xf32, #tpu.memory_space<vmem>>, vector<128x128xf32>,
    } else {
    }
    %c0 = arith.constant 0 : index
    %c0_1 = arith.constant 0 : index
    %3 = vector.load %arg2[%c0, %c0_1] : memref<128x128xf32, #tpu.memory_space<vmem>>, vector<128x128xf32>
    %c0_2 = arith.constant 0 : index
    %c0_3 = arith.constant 0 : index
    %4 = vector.load %arg3[%c0_2, %c0_3] : memref<128x256xf32, #tpu.memory_space<vmem>>, vector<128x256xf32>
    %cst = arith.constant dense<0.000000e+00> : vector<128x256xf32>
    %5 = tpu.matmul %3, %4, %cst {dimension_numbers = #tpu.dot_dimension_numbers<[1], [0], [0], [1], [0, 0, 1, 1], [], []>} : vector<128x128xf32>, vector<128x256xf32>, vector<128x256xf32> -> vector<128x256xf32>
    %c0_4 = arith.constant 0 : index
    %c0_5 = arith.constant 0 : index
    %6 = vector.load %arg4[%c0_4, %c0_5] : memref<1x256xf32, #tpu.memory_space<vmem>>, vector<1x256xf32>
    %7 = vector.broadcast %6 : vector<1x256xf32> to vector<128x256xf32>
    %8 = arith.addf %5, %7 : vector<128x256xf32>
    %cst_6 = arith.constant 5.000000e-01 : f32
    %9 = vector.broadcast %cst_6 : f32 to vector<128x256xf32>
    %10 = arith.mulf %9, %8 : vector<128x256xf32>
    %cst_7 = arith.constant 0.707106769 : f32
    %11 = vector.broadcast %cst_7 : f32 to vector<128x256xf32>
    %12 = arith.mulf %8, %11 : vector<128x256xf32>
    %13 = math.erf %12 : vector<128x256xf32>
    %cst_8 = arith.constant 1.000000e+00 : f32
    %14 = vector.broadcast %cst_8 : f32 to vector<128x256xf32>
    %15 = arith.addf %14, %13 : vector<128x256xf32>
    %16 = arith.mulf %10, %15 : vector<128x256xf32>
    %c0_9 = arith.constant 0 : index
    %c0_10 = arith.constant 0 : index
    %17 = vector.load %arg8[%c0_9, %c0_10] : memref<128x128xf32, #tpu.memory_space<vmem>>, vector<128x128xf32>
    %c0_11 = arith.constant 0 : index
    %c0_12 = arith.constant 0 : index
    %18 = vector.load %arg5[%c0_11, %c0_12] : memref<256x128xf32, #tpu.memory_space<vmem>>, vector<256x128xf32>
    %cst_13 = arith.constant dense<0.000000e+00> : vector<128x128xf32>
    %19 = tpu.matmul %16, %18, %cst_13 {dimension_numbers = #tpu.dot_dimension_numbers<[1], [0], [0], [1], [0, 0, 1, 1], [], []>} : vector<128x256xf32>, vector<256x128xf32>, vector<128x128xf32> -> vector<128x128xf32>
    %20 = arith.addf %17, %19 : vector<128x128xf32>
    %c0_14 = arith.constant 0 : index
    %c0_15 = arith.constant 0 : index
    %21 = vector.load %arg8[%c0_14, %c0_15] : memref<128x128xf32, #tpu.memory_space<vmem>>, vector<128x128xf32>
    tpu.vector_store %arg8[%c0_14, %c0_15], %20 {strides = array<i32>} : memref<128x128xf32, #tpu.memory_space<vmem>>, vector<128x128xf32>,
    %c0_i32_16 = arith.constant 0 : i32
    %22 = arith.cmpi eq, %arg1, %c0_i32_16 : i32
    %23 = arith.extui %22 : i1 to i32
    %c0_i32_17 = arith.constant 0 : i32
    %24 = arith.cmpi ne, %23, %c0_i32_17 : i32
    scf.if %24 {
      %c0_18 = arith.constant 0 : index
      %c0_19 = arith.constant 0 : index
      %25 = vector.load %arg8[%c0_18, %c0_19] : memref<128x128xf32, #tpu.memory_space<vmem>>, vector<128x128xf32>
      %c0_20 = arith.constant 0 : index
      %c0_21 = arith.constant 0 : index
      %26 = vector.load %arg6[%c0_20, %c0_21] : memref<1x128xf32, #tpu.memory_space<vmem>>, vector<1x128xf32>
      %27 = vector.broadcast %26 : vector<1x128xf32> to vector<128x128xf32>
      %28 = arith.addf %25, %27 : vector<128x128xf32>
      %c0_22 = arith.constant 0 : index
      %c0_23 = arith.constant 0 : index
      %29 = vector.load %arg7[%c0_22, %c0_23] : memref<128x128xf32, #tpu.memory_space<vmem>>, vector<128x128xf32>
      tpu.vector_store %arg7[%c0_22, %c0_23], %28 {strides = array<i32>} : memref<128x128xf32, #tpu.memory_space<vmem>>, vector<128x128xf32>,
    } else {
    }
    return
  }
  func.func @transform_0(%arg0: i32, %arg1: i32) -> (i32, i32) {
    %c0_i32 = arith.constant 0 : i32
    %c0_i32_0 = arith.constant 0 : i32
    return %arg0, %c0_i32 : i32, i32
  }
  func.func @transform_1(%arg0: i32, %arg1: i32) -> (i32, i32) {
    %c0_i32 = arith.constant 0 : i32
    %c0_i32_0 = arith.constant 0 : i32
    return %c0_i32, %arg1 : i32, i32
  }
  func.func @transform_2(%arg0: i32, %arg1: i32) -> (i32, i32) {
    %c0_i32 = arith.constant 0 : i32
    %c0_i32_0 = arith.constant 0 : i32
    return %c0_i32, %arg1 : i32, i32
  }
  func.func @transform_3(%arg0: i32, %arg1: i32) -> (i32, i32) {
    %c0_i32 = arith.constant 0 : i32
    %c0_i32_0 = arith.constant 0 : i32
    return %arg1, %c0_i32 : i32, i32
  }
  func.func @transform_4(%arg0: i32, %arg1: i32) -> (i32, i32) {
    %c0_i32 = arith.constant 0 : i32
    %c0_i32_0 = arith.constant 0 : i32
    %c0_i32_1 = arith.constant 0 : i32
    return %c0_i32, %c0_i32_0 : i32, i32
  }
  func.func @transform_5(%arg0: i32, %arg1: i32) -> (i32, i32) {
    %c0_i32 = arith.constant 0 : i32
    %c0_i32_0 = arith.constant 0 : i32
    return %arg0, %c0_i32 : i32, i32
  }
}

module attributes {stable_mosaic.version = 11 : i64} {
  func.func @_mlp_kernel(%arg0: i32, %arg1: i32, %arg2: memref<128x128xf32, #tpu.memory_space<vmem>>, %arg3: memref<128x256xf32, #tpu.memory_space<vmem>>, %arg4: memref<1x256xf32, #tpu.memory_space<vmem>>, %arg5: memref<256x128xf32, #tpu.memory_space<vmem>>, %arg6: memref<1x128xf32, #tpu.memory_space<vmem>>, %arg7: memref<128x128xf32, #tpu.memory_space<vmem>>, %arg8: memref<128x128xf32, #tpu.memory_space<vmem>>) attributes {dimension_semantics = [#tpu.dimension_semantics<parallel>, #tpu.dimension_semantics<arbitrary>], iteration_bounds = array<i64: 1, 1>, scalar_prefetch = 0 : i64, scratch_operands = 1 : i64, tpu.core_type = #tpu.core_type<tc>, window_params = [{transform_indices = @transform_0, window_bounds = array<i64: 128, 128>}, {transform_indices = @transform_1, window_bounds = array<i64: 128, 256>}, {transform_indices = @transform_2, window_bounds = array<i64: 1, 256>}, {transform_indices = @transform_3, window_bounds = array<i64: 256, 128>}, {pipeline_mode = #tpu.pipeline_mode<synchronous>, transform_indices = @transform_4, window_bounds = array<i64: 1, 128>}, {transform_indices = @transform_5, window_bounds = array<i64: 128, 128>}]} {
    %c0_i32 = arith.constant 0 : i32
    %0 = arith.cmpi eq, %arg1, %c0_i32 : i32
    %1 = arith.extui %0 : i1 to i32
    %c0_i32_0 = arith.constant 0 : i32
    %2 = arith.cmpi ne, %1, %c0_i32_0 : i32
    scf.if %2 {
      %cst_18 = arith.constant 0.000000e+00 : f32
      %25 = vector.broadcast %cst_18 : f32 to vector<128x128xf32>
      %c0_19 = arith.constant 0 : index
      %c0_20 = arith.constant 0 : index
      %26 = vector.load %arg8[%c0_19, %c0_20] : memref<128x128xf32, #tpu.memory_space<vmem>>, vector<128x128xf32>
      tpu.vector_store %arg8[%c0_19, %c0_20], %25 {strides = array<i32>} : memref<128x128xf32, #tpu.memory_space<vmem>>, vector<128x128xf32>,
    } else {
    }
    %c0 = arith.constant 0 : index
    %c0_1 = arith.constant 0 : index
    %3 = vector.load %arg2[%c0, %c0_1] : memref<128x128xf32, #tpu.memory_space<vmem>>, vector<128x128xf32>
    %c0_2 = arith.constant 0 : index
    %c0_3 = arith.constant 0 : index
    %4 = vector.load %arg3[%c0_2, %c0_3] : memref<128x256xf32, #tpu.memory_space<vmem>>, vector<128x256xf32>
    %cst = arith.constant dense<0.000000e+00> : vector<128x256xf32>
    %5 = tpu.matmul %3, %4, %cst {dimension_numbers = #tpu.dot_dimension_numbers<[1], [0], [0], [1], [0, 0, 1, 1], [], []>} : vector<128x128xf32>, vector<128x256xf32>, vector<128x256xf32> -> vector<128x256xf32>
    %c0_4 = arith.constant 0 : index
    %c0_5 = arith.constant 0 : index
    %6 = vector.load %arg4[%c0_4, %c0_5] : memref<1x256xf32, #tpu.memory_space<vmem>>, vector<1x256xf32>
    %7 = vector.broadcast %6 : vector<1x256xf32> to vector<128x256xf32>
    %8 = arith.addf %5, %7 : vector<128x256xf32>
    %cst_6 = arith.constant 5.000000e-01 : f32
    %9 = vector.broadcast %cst_6 : f32 to vector<128x256xf32>
    %10 = arith.mulf %9, %8 : vector<128x256xf32>
    %cst_7 = arith.constant 0.707106769 : f32
    %11 = vector.broadcast %cst_7 : f32 to vector<128x256xf32>
    %12 = arith.mulf %8, %11 : vector<128x256xf32>
    %13 = math.erf %12 : vector<128x256xf32>
    %cst_8 = arith.constant 1.000000e+00 : f32
    %14 = vector.broadcast %cst_8 : f32 to vector<128x256xf32>
    %15 = arith.addf %14, %13 : vector<128x256xf32>
    %16 = arith.mulf %10, %15 : vector<128x256xf32>
    %c0_9 = arith.constant 0 : index
    %c0_10 = arith.constant 0 : index
    %17 = vector.load %arg8[%c0_9, %c0_10] : memref<128x128xf32, #tpu.memory_space<vmem>>, vector<128x128xf32>
    %c0_11 = arith.constant 0 : index
    %c0_12 = arith.constant 0 : index
    %18 = vector.load %arg5[%c0_11, %c0_12] : memref<256x128xf32, #tpu.memory_space<vmem>>, vector<256x128xf32>
    %cst_13 = arith.constant dense<0.000000e+00> : vector<128x128xf32>
    %19 = tpu.matmul %16, %18, %cst_13 {dimension_numbers = #tpu.dot_dimension_numbers<[1], [0], [0], [1], [0, 0, 1, 1], [], []>} : vector<128x256xf32>, vector<256x128xf32>, vector<128x128xf32> -> vector<128x128xf32>
    %20 = arith.addf %17, %19 : vector<128x128xf32>
    %c0_14 = arith.constant 0 : index
    %c0_15 = arith.constant 0 : index
    %21 = vector.load %arg8[%c0_14, %c0_15] : memref<128x128xf32, #tpu.memory_space<vmem>>, vector<128x128xf32>
    tpu.vector_store %arg8[%c0_14, %c0_15], %20 {strides = array<i32>} : memref<128x128xf32, #tpu.memory_space<vmem>>, vector<128x128xf32>,
    %c0_i32_16 = arith.constant 0 : i32
    %22 = arith.cmpi eq, %arg1, %c0_i32_16 : i32
    %23 = arith.extui %22 : i1 to i32
    %c0_i32_17 = arith.constant 0 : i32
    %24 = arith.cmpi ne, %23, %c0_i32_17 : i32
    scf.if %24 {
      %c0_18 = arith.constant 0 : index
      %c0_19 = arith.constant 0 : index
      %25 = vector.load %arg8[%c0_18, %c0_19] : memref<128x128xf32, #tpu.memory_space<vmem>>, vector<128x128xf32>
      %c0_20 = arith.constant 0 : index
      %c0_21 = arith.constant 0 : index
      %26 = vector.load %arg6[%c0_20, %c0_21] : memref<1x128xf32, #tpu.memory_space<vmem>>, vector<1x128xf32>
      %27 = vector.broadcast %26 : vector<1x128xf32> to vector<128x128xf32>
      %28 = arith.addf %25, %27 : vector<128x128xf32>
      %c0_22 = arith.constant 0 : index
      %c0_23 = arith.constant 0 : index
      %29 = vector.load %arg7[%c0_22, %c0_23] : memref<128x128xf32, #tpu.memory_space<vmem>>, vector<128x128xf32>
      tpu.vector_store %arg7[%c0_22, %c0_23], %28 {strides = array<i32>} : memref<128x128xf32, #tpu.memory_space<vmem>>, vector<128x128xf32>,
    } else {
    }
    return
  }
  func.func @transform_0(%arg0: i32, %arg1: i32) -> (i32, i32) {
    %c0_i32 = arith.constant 0 : i32
    %c0_i32_0 = arith.constant 0 : i32
    return %arg0, %c0_i32 : i32, i32
  }
  func.func @transform_1(%arg0: i32, %arg1: i32) -> (i32, i32) {
    %c0_i32 = arith.constant 0 : i32
    %c0_i32_0 = arith.constant 0 : i32
    return %c0_i32, %arg1 : i32, i32
  }
  func.func @transform_2(%arg0: i32, %arg1: i32) -> (i32, i32) {
    %c0_i32 = arith.constant 0 : i32
    %c0_i32_0 = arith.constant 0 : i32
    return %c0_i32, %arg1 : i32, i32
  }
  func.func @transform_3(%arg0: i32, %arg1: i32) -> (i32, i32) {
    %c0_i32 = arith.constant 0 : i32
    %c0_i32_0 = arith.constant 0 : i32
    return %arg1, %c0_i32 : i32, i32
  }
  func.func @transform_4(%arg0: i32, %arg1: i32) -> (i32, i32) {
    %c0_i32 = arith.constant 0 : i32
    %c0_i32_0 = arith.constant 0 : i32
    %c0_i32_1 = arith.constant 0 : i32
    return %c0_i32, %c0_i32_0 : i32, i32
  }
  func.func @transform_5(%arg0: i32, %arg1: i32) -> (i32, i32) {
    %c0_i32 = arith.constant 0 : i32
    %c0_i32_0 = arith.constant 0 : i32
    return %arg0, %c0_i32 : i32, i32
  }
}

</mosaic_0001>

<bundles_post_ra>
// kernel: tpu_custom_call.1
= control target key start
LH: loop header
LB: loop body
LE: loop exit
PB: predicated region body
PF: predicated region fallthrough
CT: control target
= control target key end

     0   :  { %10 = vsyncpa [#allocation4], 0  ;;  %s1328_s0 = inlined_call_operand.hbm [shape: f32[128,128], index: 0, kind: input, shape index: {}]   ;;  %s1329_s1 = inlined_call_operand.hbm [shape: f32[128,256], index: 1, kind: input, shape index: {}]   ;;  %s1330_s2 = inlined_call_operand.vmem [shape: f32[1,256], index: 2, kind: input, shape index: {}]   ;;  %s1331_s3 = inlined_call_operand.hbm [shape: f32[256,128], index: 3, kind: input, shape index: {}]   ;;  %s1332_s4 = inlined_call_operand.vmem [shape: f32[1,128], index: 4, kind: input, shape index: {}]   ;;  %s1333_s5 = inlined_call_operand.hbm [shape: f32[128,128], index: 5, kind: output, shape index: {}]  }
   0x1   :  { %11 = vsyncpa [#allocation7], 0 }
   0x2   :  { %12 = vsyncpa [#allocation5], 0  ;;  %s1076_s18 = smov [#allocation6]   ;;  %s982_s22 = scalar_lea.hbm %s1329_s1, 4096 }
   0x3   :  { %s30_s19 = sshll.u32 %s1076_s18, 4  ;;  %p983_p0 = scmp.ne.s32.totalorder %s1329_s1, %s982_s22  ;;  %s31_s19 = int_to_ptr.vmem [resolvable:$true] %s30_s19 }
   0x4   :  { %p986_p1 = scmp.lt.u32.totalorder %s982_s22, %s1329_s1 }
   0x6   :  { %p988_p2 = pnand %p986_p1, %p983_p0 }
   0x8   :  { %991 = shalt.err (!%p988_p2)
}
   0x9   :  { %s992_s27 = scalar_lea.vmem %s31_s19, 4096  ;;  %p997_p4 = scmp.lt.s32.totalorder %s31_s19, %s31_s19 }
   0xa   :  { %p993_p3 = scmp.ne.s32.totalorder %s31_s19, %s992_s27  ;;  %p998_p5 = scmp.lt.s32.totalorder %s992_s27, %s992_s27 }
   0xc   :  { %p999_p6 = por %p998_p5, %p997_p4 }
   0xe   :  { %p1000_p7 = pnand %p999_p6, %p993_p3 }
  0x10   :  { %1003 = shalt.err (!%p1000_p7)
}
  0x11   :  { %s1077_s28 = smov 256   ;;  %s1078_s29 = smov 16  }
  0x12   :  { %36 = dma.hbm_to_vmem [thread:$0]  %s1329_s1, 4096, %s31_s19, [#allocation7], %s1077_s28, %s1077_s28, %s1078_s29  }
  0x13   :  { %s1079_s7 = smov [#allocation3]   ;;  %s1004_s11 = scalar_lea.hbm %s1328_s0, 2048 }
  0x14   :  { %s18_s8 = sshll.u32 %s1079_s7, 4  ;;  %p1005_p8 = scmp.ne.s32.totalorder %s1328_s0, %s1004_s11  ;;  %s19_s8 = int_to_ptr.vmem [resolvable:$true] %s18_s8 }
  0x15   :  { %p1008_p9 = scmp.lt.u32.totalorder %s1004_s11, %s1328_s0 }
  0x17   :  { %p1010_p10 = pnand %p1008_p9, %p1005_p8 }
  0x19   :  { %1013 = shalt.err (!%p1010_p10)
}
  0x1a   :  { %s1014_s16 = scalar_lea.vmem %s19_s8, 2048  ;;  %p1019_p12 = scmp.lt.s32.totalorder %s19_s8, %s19_s8 }
  0x1b   :  { %p1015_p11 = scmp.ne.s32.totalorder %s19_s8, %s1014_s16  ;;  %p1020_p13 = scmp.lt.s32.totalorder %s1014_s16, %s1014_s16 }
  0x1d   :  { %p1021_p0 = por %p1020_p13, %p1019_p12 }
  0x1f   :  { %p1022_p1 = pnand %p1021_p0, %p1015_p11 }
  0x21   :  { %1025 = shalt.err (!%p1022_p1)
}
  0x22   :  { %s1080_s1 = smov 128   ;;  %s1081_s17 = smov 8  }
  0x23   :  { %24 = dma.hbm_to_vmem [thread:$0]  %s1328_s0, 2048, %s19_s8, [#allocation4], %s1080_s1, %s1080_s1, %s1081_s17  }
  0x24   :  { %s1082_s20 = smov [#allocation8]   ;;  %s1026_s24 = scalar_lea.hbm %s1331_s3, 4096 }
  0x25   :  { %s44_s21 = sshll.u32 %s1082_s20, 4  ;;  %p1027_p2 = scmp.ne.s32.totalorder %s1331_s3, %s1026_s24  ;;  %s45_s21 = int_to_ptr.vmem [resolvable:$true] %s44_s21 }
  0x26   :  { %p1030_p3 = scmp.lt.u32.totalorder %s1026_s24, %s1331_s3 }
  0x28   :  { %p1032_p4 = pnand %p1030_p3, %p1027_p2 }
  0x2a   :  { %1035 = shalt.err (!%p1032_p4)
}
  0x2b   :  { %s1036_s29 = scalar_lea.vmem %s45_s21, 4096  ;;  %p1041_p6 = scmp.lt.s32.totalorder %s45_s21, %s45_s21 }
  0x2c   :  { %p1037_p5 = scmp.ne.s32.totalorder %s45_s21, %s1036_s29  ;;  %p1042_p7 = scmp.lt.s32.totalorder %s1036_s29, %s1036_s29 }
  0x2e   :  { %p1043_p8 = por %p1042_p7, %p1041_p6 }
  0x30   :  { %p1044_p9 = pnand %p1043_p8, %p1037_p5 }
  0x32   :  { %1047 = shalt.err (!%p1044_p9)
}
  0x33   :  { %50 = dma.hbm_to_vmem [thread:$0]  %s1331_s3, 4096, %s45_s21, [#allocation7], %s1080_s1, %s1080_s1, %s1081_s17  }
  0x34   :  { %1070 = dma.done.wait [#allocation4], 2048  }
  0x35   :  { %1071 = vsyncadd [#allocation4], 4294965248 }
  0x36   :  { %1072 = dma.done.wait [#allocation7], 8192  }
  0x37   :  { %1073 = vsyncadd [#allocation7], 4294959104  ;;  %v1083_v0 = vmov 0.0   ;;  %v99_v1 = vld [vmem:[#allocation6 + $0x8] sm:$0xff]  ;;  %v101_v2 = vld [vmem:[#allocation6 + $0x18] sm:$0xff] }
  0x38   :  { %206 = vmatprep.mubr.f32.mxu0 %v1083_v0  ;;  %v98_v3 = vld [vmem:[#allocation6] sm:$0xff]  ;;  %v845_v4 = vpack.c.bf16 %v101_v2, %v99_v1  ;;  %v100_v5 = vld [vmem:[#allocation6 + $0x10] sm:$0xff]  ;;  %v103_v6 = vld [vmem:[#allocation6 + $0x28] sm:$0xff] }
  0x39   :  { %v105_v7 = vld [vmem:[#allocation6 + $0x38] sm:$0xff]  ;;  %v847_v8 = vpack.c.bf16 %v100_v5, %v98_v3  ;;  %v102_v10 = vld [vmem:[#allocation6 + $0x20] sm:$0xff]  ;;  %v104_v11 = vld [vmem:[#allocation6 + $0x30] sm:$0xff] }
  0x3a   :  { %v849_v9 = vpack.c.bf16 %v105_v7, %v103_v6  ;;  %v107_v12 = vld [vmem:[#allocation6 + $0x48] sm:$0xff]  ;;  %846 = vmatprep.subr.bf16.mxu0 %v845_v4  ;;  %v109_v13 = vld [vmem:[#allocation6 + $0x58] sm:$0xff]  ;;  %v851_v14 = vpack.c.bf16 %v104_v11, %v102_v10  ;;  %v106_v16 = vld [vmem:[#allocation6 + $0x40] sm:$0xff] }
  0x3b   :  { %848 = vmatpush1.bf16.msra.mxu0 %v847_v8  ;;  %v853_v15 = vpack.c.bf16 %v109_v13, %v107_v12  ;;  %v108_v17 = vld [vmem:[#allocation6 + $0x50] sm:$0xff]  ;;  %v111_v18 = vld [vmem:[#allocation6 + $0x68] sm:$0xff]  ;;  %v113_v19 = vld [vmem:[#allocation6 + $0x78] sm:$0xff] }
  0x3c   :  { %850 = vmatprep.subr.bf16.mxu0 %v849_v9  ;;  %v855_v20 = vpack.c.bf16 %v108_v17, %v106_v16  ;;  %v857_v21 = vpack.c.bf16 %v113_v19, %v111_v18  ;;  %v110_v22 = vld [vmem:[#allocation6 + $0x60] sm:$0xff]  ;;  %v112_v23 = vld [vmem:[#allocation6 + $0x70] sm:$0xff]  ;;  %v115_v24 = vld [vmem:[#allocation6 + $0x88] sm:$0xff] }
  0x3d   :  { %v117_v25 = vld [vmem:[#allocation6 + $0x98] sm:$0xff]  ;;  %v859_v26 = vpack.c.bf16 %v112_v23, %v110_v22  ;;  %v114_v28 = vld [vmem:[#allocation6 + $0x80] sm:$0xff]  ;;  %v116_v29 = vld [vmem:[#allocation6 + $0x90] sm:$0xff] }
  0x3e   :  { %v861_v27 = vpack.c.bf16 %v117_v25, %v115_v24  ;;  %v119_v30 = vld [vmem:[#allocation6 + $0xa8] sm:$0xff]  ;;  %v121_v31 = vld [vmem:[#allocation6 + $0xb8] sm:$0xff]  ;;  %v118_v32 = vld [vmem:[#allocation6 + $0xa0] sm:$0xff]  ;;  %v863_v34 = vpack.c.bf16 %v116_v29, %v114_v28 }
  0x3f   :  { %852 = vmatpush1.bf16.msra.mxu0 %v851_v14  ;;  %v120_v33 = vld [vmem:[#allocation6 + $0xb0] sm:$0xff]  ;;  %v123_v35 = vld [vmem:[#allocation6 + $0xc8] sm:$0xff]  ;;  %v125_v36 = vld [vmem:[#allocation6 + $0xd8] sm:$0xff]  ;;  %v865_v40 = vpack.c.bf16 %v121_v31, %v119_v30 }
  0x40   :  { %854 = vmatprep.subr.bf16.mxu0 %v853_v15  ;;  %v495_v37 = vld [vmem:[#allocation8 + $0x80] sm:$0xff]  ;;  %v496_v38 = vld [vmem:[#allocation8 + $0x88] sm:$0xff]  ;;  %v497_v43 = vld [vmem:[#allocation8 + $0x90] sm:$0xff]  ;;  %v867_v51 = vpack.c.bf16 %v120_v33, %v118_v32  ;;  %v869_v54 = vpack.c.bf16 %v125_v36, %v123_v35 }
  0x41   :  { %v479_v39 = vld [vmem:[#allocation8] sm:$0xff]  ;;  %v877_v41 = vpack.c.bf16 %v496_v38, %v495_v37  ;;  %v480_v42 = vld [vmem:[#allocation8 + $0x8] sm:$0xff]  ;;  %v498_v44 = vld [vmem:[#allocation8 + $0x98] sm:$0xff] }
  0x42   :  { %v879_v45 = vpack.c.bf16 %v480_v42, %v479_v39  ;;  %v881_v46 = vpack.c.bf16 %v498_v44, %v497_v43  ;;  %v481_v47 = vld [vmem:[#allocation8 + $0x10] sm:$0xff]  ;;  %v482_v48 = vld [vmem:[#allocation8 + $0x18] sm:$0xff]  ;;  %v499_v49 = vld [vmem:[#allocation8 + $0xa0] sm:$0xff] }
  0x43   :  { %856 = vmatpush1.bf16.msra.mxu0 %v855_v20  ;;  %878 = vmatprep.subr.bf16.mxu1 %v877_v41  ;;  %v500_v50 = vld [vmem:[#allocation8 + $0xa8] sm:$0xff]  ;;  %v122_v52 = vld [vmem:[#allocation6 + $0xc0] sm:$0xff]  ;;  %v883_v53 = vpack.c.bf16 %v482_v48, %v481_v47  ;;  %v124_v55 = vld [vmem:[#allocation6 + $0xd0] sm:$0xff] }
  0x44   :  { %858 = vmatprep.subr.bf16.mxu0 %v857_v21  ;;  %880 = vmatpush3.bf16.msra.mxu1 %v879_v45  ;;  %v885_v56 = vpack.c.bf16 %v500_v50, %v499_v49  ;;  %v483_v57 = vld [vmem:[#allocation8 + $0x20] sm:$0xff]  ;;  %v484_v58 = vld [vmem:[#allocation8 + $0x28] sm:$0xff]  ;;  %v129_v60 = vld [vmem:[#allocation6 + $0xf8] sm:$0xff]  ;;  %v871_v61 = vpack.c.bf16 %v124_v55, %v122_v52  ;;  %v132_v49 = vlaneseq }
  0x45   :  { %882 = vmatprep.subr.bf16.mxu1 %v881_v46  ;;  %v127_v59 = vld [vmem:[#allocation6 + $0xe8] sm:$0xff]  ;;  %v887_v62 = vpack.c.bf16 %v484_v58, %v483_v57  ;;  %v126_v1 = vld [vmem:[#allocation6 + $0xe0] sm:$0xff]  ;;  %v128_v2 = vld [vmem:[#allocation6 + $0xf0] sm:$0xff] }
  0x46   :  { %v873_v63 = vpack.c.bf16 %v129_v60, %v127_v59  ;;  %v875_v3 = vpack.c.bf16 %v128_v2, %v126_v1  ;;  %v82_v4 = vld [vmem:[#allocation3] sm:$0xff]  ;;  %v83_v5 = vld [vmem:[#allocation3 + $0x8] sm:$0xff]  ;;  %v84_v6 = vld [vmem:[#allocation3 + $0x10] sm:$0xff]  ;;  %v133_v50 = vshrl.u32 %v132_v49, 7 }
  0x47   :  { %860 = vmatpush1.bf16.msra.mxu0 %v859_v26  ;;  %v85_v7 = vld [vmem:[#allocation3 + $0x18] sm:$0xff]  ;;  %v86_v8 = vld [vmem:[#allocation3 + $0x20] sm:$0xff]  ;;  %v87_v9 = vld [vmem:[#allocation3 + $0x28] sm:$0xff] }
  0x48   :  { %862 = vmatprep.subr.bf16.mxu0 %v861_v27  ;;  %884 = vmatpush3.bf16.msra.mxu1 %v883_v53  ;;  %v88_v10 = vld [vmem:[#allocation3 + $0x30] sm:$0xff]  ;;  %v89_v11 = vld [vmem:[#allocation3 + $0x38] sm:$0xff]  ;;  %v90_v12 = vld [vmem:[#allocation3 + $0x40] sm:$0xff]  ;;  %v138_v53 = vsub.s32 1, %v133_v50 }
  0x49   :  { %886 = vmatprep.subr.bf16.mxu1 %v885_v56  ;;  %v91_v13 = vld [vmem:[#allocation3 + $0x48] sm:$0xff]  ;;  %v92_v14 = vld [vmem:[#allocation3 + $0x50] sm:$0xff]  ;;  %v93_v15 = vld [vmem:[#allocation3 + $0x58] sm:$0xff] }
  0x4a   :  { %v94_v16 = vld [vmem:[#allocation3 + $0x60] sm:$0xff]  ;;  %v95_v17 = vld [vmem:[#allocation3 + $0x68] sm:$0xff]  ;;  %v96_v18 = vld [vmem:[#allocation3 + $0x70] sm:$0xff] }
  0x4b   :  { %864 = vmatpush1.bf16.msra.mxu0 %v863_v34  ;;  %v97_v19 = vld [vmem:[#allocation3 + $0x78] sm:$0xff]  ;;  %v501_v20 = vld [vmem:[#allocation8 + $0xb0] sm:$0xff]  ;;  %v503_v26 = vld [vmem:[#allocation8 + $0xc0] sm:$0xff] }
  0x4c   :  { %866 = vmatprep.subr.bf16.mxu0 %v865_v40  ;;  %888 = vmatpush3.bf16.msra.mxu1 %v887_v62  ;;  %v502_v21 = vld [vmem:[#allocation8 + $0xb8] sm:$0xff]  ;;  %v485_v23 = vld [vmem:[#allocation8 + $0x30] sm:$0xff]  ;;  %v504_v27 = vld [vmem:[#allocation8 + $0xc8] sm:$0xff] }
  0x4d   :  { %v889_v22 = vpack.c.bf16 %v502_v21, %v501_v20  ;;  %v486_v24 = vld [vmem:[#allocation8 + $0x38] sm:$0xff]  ;;  %v893_v28 = vpack.c.bf16 %v504_v27, %v503_v26  ;;  %v487_v29 = vld [vmem:[#allocation8 + $0x40] sm:$0xff]  ;;  %v488_v30 = vld [vmem:[#allocation8 + $0x48] sm:$0xff] }
  0x4e   :  { %v891_v25 = vpack.c.bf16 %v486_v24, %v485_v23  ;;  %v895_v31 = vpack.c.bf16 %v488_v30, %v487_v29  ;;  %v505_v32 = vld [vmem:[#allocation8 + $0xd0] sm:$0xff]  ;;  %v490_v35 = vld [vmem:[#allocation8 + $0x58] sm:$0xff]  ;;  %v507_v37 = vld [vmem:[#allocation8 + $0xe0] sm:$0xff] }
  0x4f   :  { %868 = vmatpush1.bf16.msra.mxu0 %v867_v51  ;;  %890 = vmatprep.subr.bf16.mxu1 %v889_v22  ;;  %v489_v34 = vld [vmem:[#allocation8 + $0x50] sm:$0xff]  ;;  %v508_v38 = vld [vmem:[#allocation8 + $0xe8] sm:$0xff]  ;;  %v491_v40 = vld [vmem:[#allocation8 + $0x60] sm:$0xff]  ;;  %v134_v51 = vsub.s32 0, %v133_v50 }
  0x50   :  { %870 = vmatprep.subr.bf16.mxu0 %v869_v54  ;;  %892 = vmatpush3.bf16.msra.mxu1 %v891_v25  ;;  %v899_v36 = vpack.c.bf16 %v490_v35, %v489_v34  ;;  %v901_v39 = vpack.c.bf16 %v508_v38, %v507_v37  ;;  %v492_v41 = vld [vmem:[#allocation8 + $0x68] sm:$0xff]  ;;  %v509_v43 = vld [vmem:[#allocation8 + $0xf0] sm:$0xff]  ;;  %v510_v44 = vld [vmem:[#allocation8 + $0xf8] sm:$0xff] }
  0x51   :  { %894 = vmatprep.subr.bf16.mxu1 %v893_v28  ;;  %v903_v42 = vpack.c.bf16 %v492_v41, %v491_v40  ;;  %v905_v45 = vpack.c.bf16 %v510_v44, %v509_v43  ;;  %v493_v46 = vld [vmem:[#allocation8 + $0x70] sm:$0xff]  ;;  %v494_v47 = vld [vmem:[#allocation8 + $0x78] sm:$0xff]  ;;  %v130_v52 = vld [vmem:[%s1330_s2] sm:$0x3] }
  0x52   :  { %v907_v48 = vpack.c.bf16 %v494_v47, %v493_v46  ;;  %v1176_v54 = vrot.slane %v130_v52, %v134_v51  ;;  %v1178_v55 = vrot.slane %v130_v52, %v138_v53 }
  0x53   :  { %872 = vmatpush1.bf16.msra.mxu0 %v871_v61 }
  0x54   :  { %874 = vmatprep.subr.bf16.mxu0 %v873_v63  ;;  %896 = vmatpush3.bf16.msra.mxu1 %v895_v31 }
  0x57   :  { %876 = vmatpush1.bf16.msra.mxu0 %v875_v3 }
  0x5a   :  { %207 = vmatmul.mubr.f32.vlgmr.msra.gmra.mrb[0].mxu0 %v82_v4 }
  0x5b   :  { %212 = vmatprep.mubr.f32.mxu0 %v1083_v0 }
  0x5e   :  { %213 = vmatmul.mubr.f32.gmra.mrb[2].mxu0 %v83_v5 }
  0x5f   :  { %218 = vmatprep.mubr.f32.mxu0 %v1083_v0 }
  0x62   :  { %219 = vmatmul.mubr.f32.gmra.mrb[4].mxu0 %v84_v6 }
  0x63   :  { %224 = vmatprep.mubr.f32.mxu0 %v1083_v0 }
  0x66   :  { %225 = vmatmul.mubr.f32.gmra.mrb[6].mxu0 %v85_v7 }
  0x67   :  { %230 = vmatprep.mubr.f32.mxu0 %v1083_v0 }
  0x6a   :  { %231 = vmatmul.mubr.f32.gmra.mrb[8].mxu0 %v86_v8 }
  0x6b   :  { %236 = vmatprep.mubr.f32.mxu0 %v1083_v0 }
  0x6e   :  { %237 = vmatmul.mubr.f32.gmra.mrb[10].mxu0 %v87_v9 }
  0x6f   :  { %242 = vmatprep.mubr.f32.mxu0 %v1083_v0 }
  0x72   :  { %243 = vmatmul.mubr.f32.gmra.mrb[12].mxu0 %v88_v10 }
  0x73   :  { %248 = vmatprep.mubr.f32.mxu0 %v1083_v0 }
  0x76   :  { %249 = vmatmul.mubr.f32.gmra.mrb[14].mxu0 %v89_v11 }
  0x77   :  { %254 = vmatprep.mubr.f32.mxu0 %v1083_v0 }
  0x7a   :  { %255 = vmatmul.mubr.f32.gmra.mrb[16].mxu0 %v90_v12 }
  0x7b   :  { %260 = vmatprep.mubr.f32.mxu0 %v1083_v0 }
  0x7e   :  { %261 = vmatmul.mubr.f32.gmra.mrb[18].mxu0 %v91_v13 }
  0x7f   :  { %266 = vmatprep.mubr.f32.mxu0 %v1083_v0 }
  0x82   :  { %267 = vmatmul.mubr.f32.gmra.mrb[20].mxu0 %v92_v14 }
  0x83   :  { %272 = vmatprep.mubr.f32.mxu0 %v1083_v0 }
  0x86   :  { %273 = vmatmul.mubr.f32.gmra.mrb[22].mxu0 %v93_v15 }
  0x87   :  { %278 = vmatprep.mubr.f32.mxu0 %v1083_v0 }
  0x8a   :  { %279 = vmatmul.mubr.f32.gmra.mrb[24].mxu0 %v94_v16 }
  0x8b   :  { %284 = vmatprep.mubr.f32.mxu0 %v1083_v0 }
  0x8e   :  { %285 = vmatmul.mubr.f32.gmra.mrb[26].mxu0 %v95_v17 }
  0x8f   :  { %290 = vmatprep.mubr.f32.mxu0 %v1083_v0 }
  0x92   :  { %291 = vmatmul.mubr.f32.gmra.mrb[28].mxu0 %v96_v18 }
  0x93   :  { %296 = vmatprep.mubr.f32.mxu0 %v1083_v0  ;;  %v506_v0 = vld [vmem:[#allocation8 + $0xd8] sm:$0xff] }
  0x94   :  { %v897_v33 = vpack.c.bf16 %v506_v0, %v505_v32 }
  0x96   :  { %297 = vmatmul.mubr.f32.gmra.mrb[30].mxu0 %v97_v19  ;;  %898 = vmatprep.subr.bf16.mxu1 %v897_v33 }
  0x97   :  { %900 = vmatpush3.bf16.msra.mxu1 %v899_v36 }
  0x98   :  { %902 = vmatprep.subr.bf16.mxu1 %v901_v39 }
  0x9b   :  { %904 = vmatpush3.bf16.msra.mxu1 %v903_v42 }
  0x9c   :  { %906 = vmatprep.subr.bf16.mxu1 %v905_v45 }
  0x9f   :  { %908 = vmatpush3.bf16.msra.mxu1 %v907_v48 }
 0x12d   :  { %v208_v56 = vpop.f32.mrb[0].mxu0 }
 0x12e   :  { %v209_v57 = vadd.f32 %v208_v56, %v1176_v54  ;;  %v210_v58 = vpop.f32.mrb[1].mxu0 }
 0x12f   :  { %v211_v59 = vadd.f32 %v210_v58, %v1178_v55 }
 0x130   :  { %v335_v60 = vmul.f32 0.70710677, %v209_v57  ;;  %v303_v25 = vmul.f32 0.5, %v209_v57 }
 0x131   :  { %v336_v61 = vmul.f32 0.70710677, %v211_v59  ;;  %v214_v62 = vpop.f32.mrb[2].mxu0  ;;  %v304_v23 = vmul.f32 0.5, %v211_v59 }
 0x132   :  { %918 = verf.f32 %v335_v60  ;;  %v215_v63 = vadd.f32 %v214_v62, %v1176_v54  ;;  %v216_v1 = vpop.f32.mrb[3].mxu0 }
 0x133   :  { %920 = verf.f32 %v336_v61  ;;  %v217_v2 = vadd.f32 %v216_v1, %v1178_v55 }
 0x134   :  { %v337_v3 = vmul.f32 0.70710677, %v215_v63  ;;  %v305_v38 = vmul.f32 0.5, %v215_v63 }
 0x135   :  { %v338_v4 = vmul.f32 0.70710677, %v217_v2  ;;  %v220_v5 = vpop.f32.mrb[4].mxu0  ;;  %v306_v34 = vmul.f32 0.5, %v217_v2 }
 0x136   :  { %922 = verf.f32 %v337_v3  ;;  %v221_v6 = vadd.f32 %v220_v5, %v1176_v54  ;;  %v222_v7 = vpop.f32.mrb[5].mxu0 }
 0x137   :  { %924 = verf.f32 %v338_v4  ;;  %v223_v8 = vadd.f32 %v222_v7, %v1178_v55 }
 0x138   :  { %v339_v9 = vmul.f32 0.70710677, %v221_v6  ;;  %v307_v52 = vmul.f32 0.5, %v221_v6 }
 0x139   :  { %v340_v10 = vmul.f32 0.70710677, %v223_v8  ;;  %v226_v11 = vpop.f32.mrb[6].mxu0  ;;  %v308_v48 = vmul.f32 0.5, %v223_v8 }
 0x13a   :  { %926 = verf.f32 %v339_v9  ;;  %v1187_v12 = vadd.f32 %v226_v11, %v1176_v54  ;;  %v228_v13 = vpop.f32.mrb[7].mxu0 }
 0x13b   :  { %928 = verf.f32 %v340_v10  ;;  %v229_v14 = vadd.f32 %v228_v13, %v1178_v55 }
 0x13c   :  { %v919_v15 = vpop.eup %918  ;;  %v341_v16 = vmul.f32 0.70710677, %v1187_v12  ;;  %v309_v5 = vmul.f32 0.5, %v1187_v12 }
 0x13d   :  { %v921_v17 = vpop.eup %920  ;;  %v399_v18 = vadd.f32 1.0, %v919_v15  ;;  %v342_v19 = vmul.f32 0.70710677, %v229_v14  ;;  %v232_v20 = vpop.f32.mrb[8].mxu0  ;;  %v310_v1 = vmul.f32 0.5, %v229_v14 }
 0x13e   :  { %930 = verf.f32 %v341_v16  ;;  %v1192_v21 = vadd.f32 %v232_v20, %v1176_v54  ;;  %v234_v22 = vpop.f32.mrb[9].mxu0  ;;  %v400_v24 = vadd.f32 1.0, %v921_v17 }
 0x13f   :  { %932 = verf.f32 %v342_v19  ;;  %v1195_v26 = vadd.f32 %v234_v22, %v1178_v55  ;;  %v431_v33 = vmul.f32 %v399_v18, %v303_v25 }
 0x140   :  { %v923_v27 = vpop.eup %922  ;;  %v343_v28 = vmul.f32 0.70710677, %v1192_v21  ;;  %v432_v29 = vmul.f32 %v400_v24, %v304_v23  ;;  %v311_v19 = vmul.f32 0.5, %v1192_v21 }
 0x141   :  { %v925_v30 = vpop.eup %924  ;;  %v401_v31 = vadd.f32 1.0, %v923_v27  ;;  %v344_v32 = vmul.f32 0.70710677, %v1195_v26  ;;  %v238_v0 = vpop.f32.mrb[10].mxu0  ;;  %v312_v16 = vmul.f32 0.5, %v1195_v26 }
 0x142   :  { %v402_v35 = vadd.f32 1.0, %v925_v30  ;;  %934 = verf.f32 %v343_v28  ;;  %v1200_v36 = vadd.f32 %v238_v0, %v1176_v54  ;;  %v240_v37 = vpop.f32.mrb[11].mxu0  ;;  %575 = vmatprep.mubr.f32.mxu1 %v432_v29 }
 0x143   :  { %936 = verf.f32 %v344_v32  ;;  %v1203_v39 = vadd.f32 %v240_v37, %v1178_v55  ;;  %576 = vmatmul.mubr.f32.vlgmr.msra.gmra.mrb[0].mxu1 %v431_v33  ;;  %v433_v47 = vmul.f32 %v401_v31, %v305_v38 }
 0x144   :  { %v927_v40 = vpop.eup %926  ;;  %v345_v41 = vmul.f32 0.70710677, %v1200_v36  ;;  %v434_v42 = vmul.f32 %v402_v35, %v306_v34  ;;  %v313_v0 = vmul.f32 0.5, %v1200_v36 }
 0x145   :  { %v929_v43 = vpop.eup %928  ;;  %v403_v44 = vadd.f32 1.0, %v927_v40  ;;  %v346_v45 = vmul.f32 0.70710677, %v1203_v39  ;;  %v244_v46 = vpop.f32.mrb[12].mxu0  ;;  %v314_v30 = vmul.f32 0.5, %v1203_v39 }
 0x146   :  { %v404_v49 = vadd.f32 1.0, %v929_v43  ;;  %938 = verf.f32 %v345_v41  ;;  %v1208_v50 = vadd.f32 %v244_v46, %v1176_v54  ;;  %v246_v51 = vpop.f32.mrb[13].mxu0  ;;  %580 = vmatprep.mubr.f32.mxu1 %v434_v42 }
 0x147   :  { %940 = verf.f32 %v346_v45  ;;  %v1211_v53 = vadd.f32 %v246_v51, %v1178_v55  ;;  %581 = vmatmul.mubr.f32.gmra.mrb[2].mxu1 %v433_v47  ;;  %v435_v63 = vmul.f32 %v403_v44, %v307_v52 }
 0x148   :  { %v931_v56 = vpop.eup %930  ;;  %v347_v57 = vmul.f32 0.70710677, %v1208_v50  ;;  %v436_v58 = vmul.f32 %v404_v49, %v308_v48  ;;  %v315_v46 = vmul.f32 0.5, %v1208_v50 }
 0x149   :  { %v933_v59 = vpop.eup %932  ;;  %v405_v60 = vadd.f32 1.0, %v931_v56  ;;  %v348_v61 = vmul.f32 0.70710677, %v1211_v53  ;;  %v250_v62 = vpop.f32.mrb[14].mxu0  ;;  %v316_v43 = vmul.f32 0.5, %v1211_v53 }
 0x14a   :  { %v406_v2 = vadd.f32 1.0, %v933_v59  ;;  %942 = verf.f32 %v347_v57  ;;  %v1216_v3 = vadd.f32 %v250_v62, %v1176_v54  ;;  %v252_v4 = vpop.f32.mrb[15].mxu0  ;;  %585 = vmatprep.mubr.f32.mxu1 %v436_v58 }
 0x14b   :  { %944 = verf.f32 %v348_v61  ;;  %v1220_v6 = vadd.f32 %v252_v4, %v1178_v55  ;;  %586 = vmatmul.mubr.f32.gmra.mrb[4].mxu1 %v435_v63  ;;  %v437_v15 = vmul.f32 %v405_v60, %v309_v5 }
 0x14c   :  { %v935_v7 = vpop.eup %934  ;;  %v349_v8 = vmul.f32 0.70710677, %v1216_v3  ;;  %v438_v9 = vmul.f32 %v406_v2, %v310_v1  ;;  %v317_v62 = vmul.f32 0.5, %v1216_v3 }
 0x14d   :  { %v937_v10 = vpop.eup %936  ;;  %v407_v11 = vadd.f32 1.0, %v935_v7  ;;  %v350_v13 = vmul.f32 0.70710677, %v1220_v6  ;;  %v256_v14 = vpop.f32.mrb[16].mxu0  ;;  %v318_v59 = vmul.f32 0.5, %v1220_v6 }
 0x14e   :  { %v408_v17 = vadd.f32 1.0, %v937_v10  ;;  %946 = verf.f32 %v349_v8  ;;  %v1226_v12 = vadd.f32 %v256_v14, %v1176_v54  ;;  %v258_v18 = vpop.f32.mrb[17].mxu0  ;;  %590 = vmatprep.mubr.f32.mxu1 %v438_v9 }
 0x14f   :  { %948 = verf.f32 %v350_v13  ;;  %v1230_v20 = vadd.f32 %v258_v18, %v1178_v55  ;;  %591 = vmatmul.mubr.f32.gmra.mrb[6].mxu1 %v437_v15  ;;  %v439_v29 = vmul.f32 %v407_v11, %v311_v19 }
 0x150   :  { %v939_v22 = vpop.eup %938  ;;  %v351_v23 = vmul.f32 0.70710677, %v1226_v12  ;;  %v440_v24 = vmul.f32 %v408_v17, %v312_v16  ;;  %v319_v14 = vmul.f32 0.5, %v1226_v12 }
 0x151   :  { %v941_v25 = vpop.eup %940  ;;  %v409_v26 = vadd.f32 1.0, %v939_v22  ;;  %v352_v27 = vmul.f32 0.70710677, %v1230_v20  ;;  %v262_v28 = vpop.f32.mrb[18].mxu0  ;;  %v320_v10 = vmul.f32 0.5, %v1230_v20 }
 0x152   :  { %v410_v31 = vadd.f32 1.0, %v941_v25  ;;  %950 = verf.f32 %v351_v23  ;;  %v1236_v21 = vadd.f32 %v262_v28, %v1176_v54  ;;  %v264_v32 = vpop.f32.mrb[19].mxu0  ;;  %595 = vmatprep.mubr.f32.mxu1 %v440_v24 }
 0x153   :  { %952 = verf.f32 %v352_v27  ;;  %v1240_v33 = vadd.f32 %v264_v32, %v1178_v55  ;;  %596 = vmatmul.mubr.f32.gmra.mrb[8].mxu1 %v439_v29  ;;  %v441_v42 = vmul.f32 %v409_v26, %v313_v0 }
 0x154   :  { %v943_v34 = vpop.eup %942  ;;  %v353_v35 = vmul.f32 0.70710677, %v1236_v21  ;;  %v442_v37 = vmul.f32 %v410_v31, %v314_v30  ;;  %v321_v28 = vmul.f32 0.5, %v1236_v21 }
 0x155   :  { %v945_v38 = vpop.eup %944  ;;  %v411_v39 = vadd.f32 1.0, %v943_v34  ;;  %v354_v40 = vmul.f32 0.70710677, %v1240_v33  ;;  %v268_v41 = vpop.f32.mrb[20].mxu0  ;;  %v322_v25 = vmul.f32 0.5, %v1240_v33 }
 0x156   :  { %v412_v44 = vadd.f32 1.0, %v945_v38  ;;  %954 = verf.f32 %v353_v35  ;;  %v1246_v36 = vadd.f32 %v268_v41, %v1176_v54  ;;  %v270_v45 = vpop.f32.mrb[21].mxu0  ;;  %600 = vmatprep.mubr.f32.mxu1 %v442_v37 }
 0x157   :  { %956 = verf.f32 %v354_v40  ;;  %v1250_v47 = vadd.f32 %v270_v45, %v1178_v55  ;;  %601 = vmatmul.mubr.f32.gmra.mrb[10].mxu1 %v441_v42  ;;  %v443_v58 = vmul.f32 %v411_v39, %v315_v46 }
 0x158   :  { %v947_v48 = vpop.eup %946  ;;  %v355_v49 = vmul.f32 0.70710677, %v1246_v36  ;;  %v444_v51 = vmul.f32 %v412_v44, %v316_v43  ;;  %v323_v41 = vmul.f32 0.5, %v1246_v36 }
 0x159   :  { %v949_v52 = vpop.eup %948  ;;  %v413_v53 = vadd.f32 1.0, %v947_v48  ;;  %v356_v56 = vmul.f32 0.70710677, %v1250_v47  ;;  %v274_v57 = vpop.f32.mrb[22].mxu0  ;;  %v324_v38 = vmul.f32 0.5, %v1250_v47 }
 0x15a   :  { %v414_v60 = vadd.f32 1.0, %v949_v52  ;;  %958 = verf.f32 %v355_v49  ;;  %v1256_v50 = vadd.f32 %v274_v57, %v1176_v54  ;;  %v276_v61 = vpop.f32.mrb[23].mxu0  ;;  %605 = vmatprep.mubr.f32.mxu1 %v444_v51 }
 0x15b   :  { %960 = verf.f32 %v356_v56  ;;  %v1260_v63 = vadd.f32 %v276_v61, %v1178_v55  ;;  %606 = vmatmul.mubr.f32.gmra.mrb[12].mxu1 %v443_v58  ;;  %v445_v9 = vmul.f32 %v413_v53, %v317_v62 }
 0x15c   :  { %v951_v1 = vpop.eup %950  ;;  %v357_v2 = vmul.f32 0.70710677, %v1256_v50  ;;  %v446_v4 = vmul.f32 %v414_v60, %v318_v59  ;;  %v325_v36 = vmul.f32 0.5, %v1256_v50 }
 0x15d   :  { %v953_v5 = vpop.eup %952  ;;  %v415_v6 = vadd.f32 1.0, %v951_v1  ;;  %v358_v7 = vmul.f32 0.70710677, %v1260_v63  ;;  %v280_v8 = vpop.f32.mrb[24].mxu0  ;;  %v326_v52 = vmul.f32 0.5, %v1260_v63 }
 0x15e   :  { %v416_v11 = vadd.f32 1.0, %v953_v5  ;;  %962 = verf.f32 %v357_v2  ;;  %v1266_v3 = vadd.f32 %v280_v8, %v1176_v54  ;;  %v282_v13 = vpop.f32.mrb[25].mxu0  ;;  %610 = vmatprep.mubr.f32.mxu1 %v446_v4 }
 0x15f   :  { %964 = verf.f32 %v358_v7  ;;  %v1270_v15 = vadd.f32 %v282_v13, %v1178_v55  ;;  %611 = vmatmul.mubr.f32.gmra.mrb[14].mxu1 %v445_v9  ;;  %v447_v24 = vmul.f32 %v415_v6, %v319_v14 }
 0x160   :  { %v955_v16 = vpop.eup %954  ;;  %v359_v17 = vmul.f32 0.70710677, %v1266_v3  ;;  %v448_v18 = vmul.f32 %v416_v11, %v320_v10 }
 0x161   :  { %v957_v19 = vpop.eup %956  ;;  %v417_v20 = vadd.f32 1.0, %v955_v16  ;;  %v360_v22 = vmul.f32 0.70710677, %v1270_v15  ;;  %v286_v23 = vpop.f32.mrb[26].mxu0  ;;  %v328_v63 = vmul.f32 0.5, %v1270_v15 }
 0x162   :  { %v418_v26 = vadd.f32 1.0, %v957_v19  ;;  %966 = verf.f32 %v359_v17  ;;  %v1276_v12 = vadd.f32 %v286_v23, %v1176_v54  ;;  %v288_v27 = vpop.f32.mrb[27].mxu0  ;;  %615 = vmatprep.mubr.f32.mxu1 %v448_v18 }
 0x163   :  { %968 = verf.f32 %v360_v22  ;;  %v289_v29 = vadd.f32 %v288_v27, %v1178_v55  ;;  %616 = vmatmul.mubr.f32.gmra.mrb[16].mxu1 %v447_v24  ;;  %v449_v37 = vmul.f32 %v417_v20, %v321_v28 }
 0x164   :  { %v959_v30 = vpop.eup %958  ;;  %v361_v31 = vmul.f32 0.70710677, %v1276_v12  ;;  %v450_v32 = vmul.f32 %v418_v26, %v322_v25  ;;  %v329_v11 = vmul.f32 0.5, %v1276_v12 }
 0x165   :  { %v961_v0 = vpop.eup %960  ;;  %v419_v34 = vadd.f32 1.0, %v959_v30  ;;  %v362_v33 = vmul.f32 0.70710677, %v289_v29  ;;  %v292_v35 = vpop.f32.mrb[28].mxu0  ;;  %v330_v9 = vmul.f32 0.5, %v289_v29 }
 0x166   :  { %v420_v39 = vadd.f32 1.0, %v961_v0  ;;  %970 = verf.f32 %v361_v31  ;;  %v293_v40 = vadd.f32 %v292_v35, %v1176_v54  ;;  %v294_v21 = vpop.f32.mrb[29].mxu0  ;;  %620 = vmatprep.mubr.f32.mxu1 %v450_v32  ;;  %v1295_v32 = vld [vmem:[%s1332_s4] ss:$0 sm:$0xff]  ;;  %s1084_s4 = smov [#allocation9]  }
 0x167   :  { %972 = verf.f32 %v362_v33  ;;  %v295_v42 = vadd.f32 %v294_v21, %v1178_v55  ;;  %621 = vmatmul.mubr.f32.gmra.mrb[18].mxu1 %v449_v37  ;;  %v451_v47 = vmul.f32 %v419_v34, %v323_v41  ;;  %s751_s8 = sshll.u32 %s1084_s4, 4  ;;  %s752_s8 = int_to_ptr.vmem [resolvable:$true] %s751_s8 }
 0x168   :  { %v963_v43 = vpop.eup %962  ;;  %v363_v44 = vmul.f32 0.70710677, %v293_v40  ;;  %v452_v45 = vmul.f32 %v420_v39, %v324_v38  ;;  %v331_v19 = vmul.f32 0.5, %v293_v40  ;;  %s1048_s9 = scalar_lea.vmem %s752_s8, 2048  ;;  %p1053_p11 = scmp.lt.s32.totalorder %s752_s8, %s752_s8 }
 0x169   :  { %v965_v46 = vpop.eup %964  ;;  %v421_v48 = vadd.f32 1.0, %v963_v43  ;;  %v364_v49 = vmul.f32 0.70710677, %v295_v42  ;;  %v298_v51 = vpop.f32.mrb[30].mxu0  ;;  %v332_v18 = vmul.f32 0.5, %v295_v42  ;;  %p1049_p10 = scmp.ne.s32.totalorder %s752_s8, %s1048_s9  ;;  %p1054_p12 = scmp.lt.s32.totalorder %s1048_s9, %s1048_s9 }
 0x16a   :  { %v422_v53 = vadd.f32 1.0, %v965_v46  ;;  %974 = verf.f32 %v363_v44  ;;  %v299_v56 = vadd.f32 %v298_v51, %v1176_v54  ;;  %v300_v57 = vpop.f32.mrb[31].mxu0  ;;  %625 = vmatprep.mubr.f32.mxu1 %v452_v45  ;;  %v327_v54 = vmul.f32 0.5, %v1266_v3 }
 0x16b   :  { %976 = verf.f32 %v364_v49  ;;  %v301_v58 = vadd.f32 %v300_v57, %v1178_v55  ;;  %626 = vmatmul.mubr.f32.gmra.mrb[20].mxu1 %v451_v47  ;;  %v453_v4 = vmul.f32 %v421_v48, %v325_v36  ;;  %p1055_p13 = por %p1054_p12, %p1053_p11 }
 0x16c   :  { %v967_v59 = vpop.eup %966  ;;  %v365_v60 = vmul.f32 0.70710677, %v299_v56  ;;  %v454_v61 = vmul.f32 %v422_v53, %v326_v52  ;;  %v333_v12 = vmul.f32 0.5, %v299_v56 }
 0x16d   :  { %v969_v62 = vpop.eup %968  ;;  %v423_v1 = vadd.f32 1.0, %v967_v59  ;;  %v366_v2 = vmul.f32 0.70710677, %v301_v58  ;;  %v334_v26 = vmul.f32 0.5, %v301_v58  ;;  %p1056_p0 = pnand %p1055_p13, %p1049_p10 }
 0x16e   :  { %v424_v5 = vadd.f32 1.0, %v969_v62  ;;  %978 = verf.f32 %v365_v60  ;;  %630 = vmatprep.mubr.f32.mxu1 %v454_v61 }
 0x16f   :  { %980 = verf.f32 %v366_v2  ;;  %631 = vmatmul.mubr.f32.gmra.mrb[22].mxu1 %v453_v4  ;;  %v455_v8 = vmul.f32 %v423_v1, %v327_v54 }
 0x170   :  { %v971_v50 = vpop.eup %970  ;;  %v456_v6 = vmul.f32 %v424_v5, %v328_v63 }
 0x171   :  { %v973_v55 = vpop.eup %972  ;;  %v425_v7 = vadd.f32 1.0, %v971_v50 }
 0x172   :  { %v426_v10 = vadd.f32 1.0, %v973_v55  ;;  %635 = vmatprep.mubr.f32.mxu1 %v456_v6 }
 0x173   :  { %636 = vmatmul.mubr.f32.gmra.mrb[24].mxu1 %v455_v8  ;;  %v457_v17 = vmul.f32 %v425_v7, %v329_v11 }
 0x174   :  { %v975_v13 = vpop.eup %974  ;;  %v458_v14 = vmul.f32 %v426_v10, %v330_v9 }
 0x175   :  { %v977_v15 = vpop.eup %976  ;;  %v427_v16 = vadd.f32 1.0, %v975_v13 }
 0x176   :  { %v428_v3 = vadd.f32 1.0, %v977_v15  ;;  %640 = vmatprep.mubr.f32.mxu1 %v458_v14 }
 0x177   :  { %641 = vmatmul.mubr.f32.gmra.mrb[26].mxu1 %v457_v17  ;;  %v459_v25 = vmul.f32 %v427_v16, %v331_v19 }
 0x178   :  { %v979_v20 = vpop.eup %978  ;;  %v460_v22 = vmul.f32 %v428_v3, %v332_v18 }
 0x179   :  { %v981_v23 = vpop.eup %980  ;;  %v429_v24 = vadd.f32 1.0, %v979_v20 }
 0x17a   :  { %v430_v27 = vadd.f32 1.0, %v981_v23  ;;  %645 = vmatprep.mubr.f32.mxu1 %v460_v22 }
 0x17b   :  { %646 = vmatmul.mubr.f32.gmra.mrb[28].mxu1 %v459_v25  ;;  %v461_v29 = vmul.f32 %v429_v24, %v333_v12 }
 0x17c   :  { %v462_v28 = vmul.f32 %v430_v27, %v334_v26 }
 0x17e   :  { %650 = vmatprep.mubr.f32.mxu1 %v462_v28 }
 0x17f   :  { %651 = vmatmul.mubr.f32.gmra.mrb[30].mxu1 %v461_v29 }
 0x216   :  { %v797_v30 = vpop.f32.mrb[0].mxu1 }
 0x217   :  { %v798_v31 = vpop.f32.mrb[1].mxu1 }
 0x218   :  { %v799_v0 = vadd.f32 %v798_v31, %v797_v30 }
 0x21a   :  { %v714_v34 = vadd.f32 %v799_v0, %v1295_v32  ;;  %v800_v33 = vpop.f32.mrb[2].mxu1 }
 0x21b   :  { %v801_v35 = vpop.f32.mrb[3].mxu1 }
 0x21c   :  { %730 = vst [vmem:[#allocation9] sm:$0xff] %v714_v34  ;;  %v802_v37 = vadd.f32 %v801_v35, %v800_v33 }
 0x21e   :  { %v715_v38 = vadd.f32 %v802_v37, %v1295_v32  ;;  %v803_v39 = vpop.f32.mrb[4].mxu1 }
 0x21f   :  { %v804_v40 = vpop.f32.mrb[5].mxu1 }
 0x220   :  { %731 = vst [vmem:[#allocation9 + $0x8] sm:$0xff] %v715_v38  ;;  %v805_v21 = vadd.f32 %v804_v40, %v803_v39 }
 0x222   :  { %v716_v41 = vadd.f32 %v805_v21, %v1295_v32  ;;  %v806_v42 = vpop.f32.mrb[6].mxu1 }
 0x223   :  { %v807_v43 = vpop.f32.mrb[7].mxu1 }
 0x224   :  { %732 = vst [vmem:[#allocation9 + $0x10] sm:$0xff] %v716_v41  ;;  %v808_v44 = vadd.f32 %v807_v43, %v806_v42 }
 0x226   :  { %v717_v45 = vadd.f32 %v808_v44, %v1295_v32  ;;  %v809_v46 = vpop.f32.mrb[8].mxu1 }
 0x227   :  { %v810_v48 = vpop.f32.mrb[9].mxu1 }
 0x228   :  { %733 = vst [vmem:[#allocation9 + $0x18] sm:$0xff] %v717_v45  ;;  %v811_v49 = vadd.f32 %v810_v48, %v809_v46 }
 0x22a   :  { %v718_v51 = vadd.f32 %v811_v49, %v1295_v32  ;;  %v812_v47 = vpop.f32.mrb[10].mxu1 }
 0x22b   :  { %v813_v52 = vpop.f32.mrb[11].mxu1 }
 0x22c   :  { %734 = vst [vmem:[#allocation9 + $0x20] sm:$0xff] %v718_v51  ;;  %v814_v53 = vadd.f32 %v813_v52, %v812_v47 }
 0x22e   :  { %v719_v56 = vadd.f32 %v814_v53, %v1295_v32  ;;  %v815_v57 = vpop.f32.mrb[12].mxu1 }
 0x22f   :  { %v816_v36 = vpop.f32.mrb[13].mxu1 }
 0x230   :  { %735 = vst [vmem:[#allocation9 + $0x28] sm:$0xff] %v719_v56  ;;  %v817_v58 = vadd.f32 %v816_v36, %v815_v57 }
 0x232   :  { %v720_v59 = vadd.f32 %v817_v58, %v1295_v32  ;;  %v818_v60 = vpop.f32.mrb[14].mxu1 }
 0x233   :  { %v819_v61 = vpop.f32.mrb[15].mxu1 }
 0x234   :  { %736 = vst [vmem:[#allocation9 + $0x30] sm:$0xff] %v720_v59  ;;  %v820_v62 = vadd.f32 %v819_v61, %v818_v60 }
 0x236   :  { %v721_v1 = vadd.f32 %v820_v62, %v1295_v32  ;;  %v821_v2 = vpop.f32.mrb[16].mxu1 }
 0x237   :  { %v822_v4 = vpop.f32.mrb[17].mxu1 }
 0x238   :  { %737 = vst [vmem:[#allocation9 + $0x38] sm:$0xff] %v721_v1  ;;  %v823_v63 = vadd.f32 %v822_v4, %v821_v2 }
 0x23a   :  { %v722_v5 = vadd.f32 %v823_v63, %v1295_v32  ;;  %v824_v54 = vpop.f32.mrb[18].mxu1 }
 0x23b   :  { %v825_v50 = vpop.f32.mrb[19].mxu1 }
 0x23c   :  { %738 = vst [vmem:[#allocation9 + $0x40] sm:$0xff] %v722_v5  ;;  %v826_v6 = vadd.f32 %v825_v50, %v824_v54 }
 0x23e   :  { %v723_v55 = vadd.f32 %v826_v6, %v1295_v32  ;;  %v827_v7 = vpop.f32.mrb[20].mxu1 }
 0x23f   :  { %v828_v8 = vpop.f32.mrb[21].mxu1 }
 0x240   :  { %739 = vst [vmem:[#allocation9 + $0x48] sm:$0xff] %v723_v55  ;;  %v829_v9 = vadd.f32 %v828_v8, %v827_v7 }
 0x242   :  { %v724_v10 = vadd.f32 %v829_v9, %v1295_v32  ;;  %v830_v11 = vpop.f32.mrb[22].mxu1 }
 0x243   :  { %v831_v13 = vpop.f32.mrb[23].mxu1 }
 0x244   :  { %740 = vst [vmem:[#allocation9 + $0x50] sm:$0xff] %v724_v10  ;;  %v832_v14 = vadd.f32 %v831_v13, %v830_v11 }
 0x246   :  { %v725_v15 = vadd.f32 %v832_v14, %v1295_v32  ;;  %v833_v16 = vpop.f32.mrb[24].mxu1 }
 0x247   :  { %v834_v17 = vpop.f32.mrb[25].mxu1 }
 0x248   :  { %741 = vst [vmem:[#allocation9 + $0x58] sm:$0xff] %v725_v15  ;;  %v835_v18 = vadd.f32 %v834_v17, %v833_v16 }
 0x24a   :  { %v726_v3 = vadd.f32 %v835_v18, %v1295_v32  ;;  %v836_v19 = vpop.f32.mrb[26].mxu1 }
 0x24b   :  { %v837_v20 = vpop.f32.mrb[27].mxu1 }
 0x24c   :  { %742 = vst [vmem:[#allocation9 + $0x60] sm:$0xff] %v726_v3  ;;  %v838_v22 = vadd.f32 %v837_v20, %v836_v19 }
 0x24e   :  { %v727_v23 = vadd.f32 %v838_v22, %v1295_v32  ;;  %v839_v24 = vpop.f32.mrb[28].mxu1 }
 0x24f   :  { %v840_v25 = vpop.f32.mrb[29].mxu1 }
 0x250   :  { %743 = vst [vmem:[#allocation9 + $0x68] sm:$0xff] %v727_v23  ;;  %v841_v26 = vadd.f32 %v840_v25, %v839_v24 }
 0x252   :  { %v728_v27 = vadd.f32 %v841_v26, %v1295_v32  ;;  %v842_v12 = vpop.f32.mrb[30].mxu1 }
 0x253   :  { %v843_v28 = vpop.f32.mrb[31].mxu1 }
 0x254   :  { %744 = vst [vmem:[#allocation9 + $0x70] sm:$0xff] %v728_v27  ;;  %v844_v29 = vadd.f32 %v843_v28, %v842_v12 }
 0x256   :  { %v729_v30 = vadd.f32 %v844_v29, %v1295_v32 }
 0x258   :  { %745 = vst [vmem:[#allocation9 + $0x78] sm:$0xff] %v729_v30 }
 0x259   :  { %1059 = shalt.err (!%p1056_p0)
}
 0x25a   :  { %s1060_s12 = scalar_lea.hbm %s1333_s5, 2048 }
 0x25b   :  { %p1061_p1 = scmp.ne.s32.totalorder %s1333_s5, %s1060_s12  ;;  %p1064_p2 = scmp.lt.u32.totalorder %s1060_s12, %s1333_s5 }
 0x25d   :  { %p1066_p3 = pnand %p1064_p2, %p1061_p1 }
 0x25f   :  { %1069 = shalt.err (!%p1066_p3)
}
 0x260   :  { %757 = dma.vmem_to_hbm [thread:$0]  %s752_s8, 2048, %s1333_s5, [#allocation5], %s1080_s1, %s1080_s1, %s1081_s17  }
 0x261   :  { %1074 = dma.done.wait [#allocation5], 2048  }
 0x262   :  { %1075 = vsyncadd [#allocation5], 4294965248 }
 0x263   :  { %761 = vsyncpa [#allocation4], 1 }
 0x264   :  { %762 = vsyncpa [#allocation7], 1 }
 0x265   :  { %763 = vsyncpa [#allocation5], 1 }

// kernel: tpu_custom_call.1
= control target key start
LH: loop header
LB: loop body
LE: loop exit
PB: predicated region body
PF: predicated region fallthrough
CT: control target
= control target key end

     0   :  { %10 = vsyncpa [#allocation4], 0  ;;  %s1328_s0 = inlined_call_operand.hbm [shape: f32[128,128], index: 0, kind: input, shape index: {}]   ;;  %s1329_s1 = inlined_call_operand.hbm [shape: f32[128,256], index: 1, kind: input, shape index: {}]   ;;  %s1330_s2 = inlined_call_operand.vmem [shape: f32[1,256], index: 2, kind: input, shape index: {}]   ;;  %s1331_s3 = inlined_call_operand.hbm [shape: f32[256,128], index: 3, kind: input, shape index: {}]   ;;  %s1332_s4 = inlined_call_operand.vmem [shape: f32[1,128], index: 4, kind: input, shape index: {}]   ;;  %s1333_s5 = inlined_call_operand.hbm [shape: f32[128,128], index: 5, kind: output, shape index: {}]  }
   0x1   :  { %11 = vsyncpa [#allocation7], 0 }
   0x2   :  { %12 = vsyncpa [#allocation5], 0  ;;  %s1076_s18 = smov [#allocation6]   ;;  %s982_s22 = scalar_lea.hbm %s1329_s1, 4096 }
   0x3   :  { %s30_s19 = sshll.u32 %s1076_s18, 4  ;;  %p983_p0 = scmp.ne.s32.totalorder %s1329_s1, %s982_s22  ;;  %s31_s19 = int_to_ptr.vmem [resolvable:$true] %s30_s19 }
   0x4   :  { %p986_p1 = scmp.lt.u32.totalorder %s982_s22, %s1329_s1 }
   0x6   :  { %p988_p2 = pnand %p986_p1, %p983_p0 }
   0x8   :  { %991 = shalt.err (!%p988_p2)
}
   0x9   :  { %s992_s27 = scalar_lea.vmem %s31_s19, 4096  ;;  %p997_p4 = scmp.lt.s32.totalorder %s31_s19, %s31_s19 }
   0xa   :  { %p993_p3 = scmp.ne.s32.totalorder %s31_s19, %s992_s27  ;;  %p998_p5 = scmp.lt.s32.totalorder %s992_s27, %s992_s27 }
   0xc   :  { %p999_p6 = por %p998_p5, %p997_p4 }
   0xe   :  { %p1000_p7 = pnand %p999_p6, %p993_p3 }
  0x10   :  { %1003 = shalt.err (!%p1000_p7)
}
  0x11   :  { %s1077_s28 = smov 256   ;;  %s1078_s29 = smov 16  }
  0x12   :  { %36 = dma.hbm_to_vmem [thread:$0]  %s1329_s1, 4096, %s31_s19, [#allocation7], %s1077_s28, %s1077_s28, %s1078_s29  }
  0x13   :  { %s1079_s7 = smov [#allocation3]   ;;  %s1004_s11 = scalar_lea.hbm %s1328_s0, 2048 }
  0x14   :  { %s18_s8 = sshll.u32 %s1079_s7, 4  ;;  %p1005_p8 = scmp.ne.s32.totalorder %s1328_s0, %s1004_s11  ;;  %s19_s8 = int_to_ptr.vmem [resolvable:$true] %s18_s8 }
  0x15   :  { %p1008_p9 = scmp.lt.u32.totalorder %s1004_s11, %s1328_s0 }
  0x17   :  { %p1010_p10 = pnand %p1008_p9, %p1005_p8 }
  0x19   :  { %1013 = shalt.err (!%p1010_p10)
}
  0x1a   :  { %s1014_s16 = scalar_lea.vmem %s19_s8, 2048  ;;  %p1019_p12 = scmp.lt.s32.totalorder %s19_s8, %s19_s8 }
  0x1b   :  { %p1015_p11 = scmp.ne.s32.totalorder %s19_s8, %s1014_s16  ;;  %p1020_p13 = scmp.lt.s32.totalorder %s1014_s16, %s1014_s16 }
  0x1d   :  { %p1021_p0 = por %p1020_p13, %p1019_p12 }
  0x1f   :  { %p1022_p1 = pnand %p1021_p0, %p1015_p11 }
  0x21   :  { %1025 = shalt.err (!%p1022_p1)
}
  0x22   :  { %s1080_s1 = smov 128   ;;  %s1081_s17 = smov 8  }
  0x23   :  { %24 = dma.hbm_to_vmem [thread:$0]  %s1328_s0, 2048, %s19_s8, [#allocation4], %s1080_s1, %s1080_s1, %s1081_s17  }
  0x24   :  { %s1082_s20 = smov [#allocation8]   ;;  %s1026_s24 = scalar_lea.hbm %s1331_s3, 4096 }
  0x25   :  { %s44_s21 = sshll.u32 %s1082_s20, 4  ;;  %p1027_p2 = scmp.ne.s32.totalorder %s1331_s3, %s1026_s24  ;;  %s45_s21 = int_to_ptr.vmem [resolvable:$true] %s44_s21 }
  0x26   :  { %p1030_p3 = scmp.lt.u32.totalorder %s1026_s24, %s1331_s3 }
  0x28   :  { %p1032_p4 = pnand %p1030_p3, %p1027_p2 }
  0x2a   :  { %1035 = shalt.err (!%p1032_p4)
}
  0x2b   :  { %s1036_s29 = scalar_lea.vmem %s45_s21, 4096  ;;  %p1041_p6 = scmp.lt.s32.totalorder %s45_s21, %s45_s21 }
  0x2c   :  { %p1037_p5 = scmp.ne.s32.totalorder %s45_s21, %s1036_s29  ;;  %p1042_p7 = scmp.lt.s32.totalorder %s1036_s29, %s1036_s29 }
  0x2e   :  { %p1043_p8 = por %p1042_p7, %p1041_p6 }
  0x30   :  { %p1044_p9 = pnand %p1043_p8, %p1037_p5 }
  0x32   :  { %1047 = shalt.err (!%p1044_p9)
}
  0x33   :  { %50 = dma.hbm_to_vmem [thread:$0]  %s1331_s3, 4096, %s45_s21, [#allocation7], %s1080_s1, %s1080_s1, %s1081_s17  }
  0x34   :  { %1070 = dma.done.wait [#allocation4], 2048  }
  0x35   :  { %1071 = vsyncadd [#allocation4], 4294965248 }
  0x36   :  { %1072 = dma.done.wait [#allocation7], 8192  }
  0x37   :  { %1073 = vsyncadd [#allocation7], 4294959104  ;;  %v1083_v0 = vmov 0.0   ;;  %v99_v1 = vld [vmem:[#allocation6 + $0x8] sm:$0xff]  ;;  %v101_v2 = vld [vmem:[#allocation6 + $0x18] sm:$0xff] }
  0x38   :  { %206 = vmatprep.mubr.f32.mxu0 %v1083_v0  ;;  %v98_v3 = vld [vmem:[#allocation6] sm:$0xff]  ;;  %v845_v4 = vpack.c.bf16 %v101_v2, %v99_v1  ;;  %v100_v5 = vld [vmem:[#allocation6 + $0x10] sm:$0xff]  ;;  %v103_v6 = vld [vmem:[#allocation6 + $0x28] sm:$0xff] }
  0x39   :  { %v105_v7 = vld [vmem:[#allocation6 + $0x38] sm:$0xff]  ;;  %v847_v8 = vpack.c.bf16 %v100_v5, %v98_v3  ;;  %v102_v10 = vld [vmem:[#allocation6 + $0x20] sm:$0xff]  ;;  %v104_v11 = vld [vmem:[#allocation6 + $0x30] sm:$0xff] }
  0x3a   :  { %v849_v9 = vpack.c.bf16 %v105_v7, %v103_v6  ;;  %v107_v12 = vld [vmem:[#allocation6 + $0x48] sm:$0xff]  ;;  %846 = vmatprep.subr.bf16.mxu0 %v845_v4  ;;  %v109_v13 = vld [vmem:[#allocation6 + $0x58] sm:$0xff]  ;;  %v851_v14 = vpack.c.bf16 %v104_v11, %v102_v10  ;;  %v106_v16 = vld [vmem:[#allocation6 + $0x40] sm:$0xff] }
  0x3b   :  { %848 = vmatpush1.bf16.msra.mxu0 %v847_v8  ;;  %v853_v15 = vpack.c.bf16 %v109_v13, %v107_v12  ;;  %v108_v17 = vld [vmem:[#allocation6 + $0x50] sm:$0xff]  ;;  %v111_v18 = vld [vmem:[#allocation6 + $0x68] sm:$0xff]  ;;  %v113_v19 = vld [vmem:[#allocation6 + $0x78] sm:$0xff] }
  0x3c   :  { %850 = vmatprep.subr.bf16.mxu0 %v849_v9  ;;  %v855_v20 = vpack.c.bf16 %v108_v17, %v106_v16  ;;  %v857_v21 = vpack.c.bf16 %v113_v19, %v111_v18  ;;  %v110_v22 = vld [vmem:[#allocation6 + $0x60] sm:$0xff]  ;;  %v112_v23 = vld [vmem:[#allocation6 + $0x70] sm:$0xff]  ;;  %v115_v24 = vld [vmem:[#allocation6 + $0x88] sm:$0xff] }
  0x3d   :  { %v117_v25 = vld [vmem:[#allocation6 + $0x98] sm:$0xff]  ;;  %v859_v26 = vpack.c.bf16 %v112_v23, %v110_v22  ;;  %v114_v28 = vld [vmem:[#allocation6 + $0x80] sm:$0xff]  ;;  %v116_v29 = vld [vmem:[#allocation6 + $0x90] sm:$0xff] }
  0x3e   :  { %v861_v27 = vpack.c.bf16 %v117_v25, %v115_v24  ;;  %v119_v30 = vld [vmem:[#allocation6 + $0xa8] sm:$0xff]  ;;  %v121_v31 = vld [vmem:[#allocation6 + $0xb8] sm:$0xff]  ;;  %v118_v32 = vld [vmem:[#allocation6 + $0xa0] sm:$0xff]  ;;  %v863_v34 = vpack.c.bf16 %v116_v29, %v114_v28 }
  0x3f   :  { %852 = vmatpush1.bf16.msra.mxu0 %v851_v14  ;;  %v120_v33 = vld [vmem:[#allocation6 + $0xb0] sm:$0xff]  ;;  %v123_v35 = vld [vmem:[#allocation6 + $0xc8] sm:$0xff]  ;;  %v125_v36 = vld [vmem:[#allocation6 + $0xd8] sm:$0xff]  ;;  %v865_v40 = vpack.c.bf16 %v121_v31, %v119_v30 }
  0x40   :  { %854 = vmatprep.subr.bf16.mxu0 %v853_v15  ;;  %v495_v37 = vld [vmem:[#allocation8 + $0x80] sm:$0xff]  ;;  %v496_v38 = vld [vmem:[#allocation8 + $0x88] sm:$0xff]  ;;  %v497_v43 = vld [vmem:[#allocation8 + $0x90] sm:$0xff]  ;;  %v867_v51 = vpack.c.bf16 %v120_v33, %v118_v32  ;;  %v869_v54 = vpack.c.bf16 %v125_v36, %v123_v35 }
  0x41   :  { %v479_v39 = vld [vmem:[#allocation8] sm:$0xff]  ;;  %v877_v41 = vpack.c.bf16 %v496_v38, %v495_v37  ;;  %v480_v42 = vld [vmem:[#allocation8 + $0x8] sm:$0xff]  ;;  %v498_v44 = vld [vmem:[#allocation8 + $0x98] sm:$0xff] }
  0x42   :  { %v879_v45 = vpack.c.bf16 %v480_v42, %v479_v39  ;;  %v881_v46 = vpack.c.bf16 %v498_v44, %v497_v43  ;;  %v481_v47 = vld [vmem:[#allocation8 + $0x10] sm:$0xff]  ;;  %v482_v48 = vld [vmem:[#allocation8 + $0x18] sm:$0xff]  ;;  %v499_v49 = vld [vmem:[#allocation8 + $0xa0] sm:$0xff] }
  0x43   :  { %856 = vmatpush1.bf16.msra.mxu0 %v855_v20  ;;  %878 = vmatprep.subr.bf16.mxu1 %v877_v41  ;;  %v500_v50 = vld [vmem:[#allocation8 + $0xa8] sm:$0xff]  ;;  %v122_v52 = vld [vmem:[#allocation6 + $0xc0] sm:$0xff]  ;;  %v883_v53 = vpack.c.bf16 %v482_v48, %v481_v47  ;;  %v124_v55 = vld [vmem:[#allocation6 + $0xd0] sm:$0xff] }
  0x44   :  { %858 = vmatprep.subr.bf16.mxu0 %v857_v21  ;;  %880 = vmatpush3.bf16.msra.mxu1 %v879_v45  ;;  %v885_v56 = vpack.c.bf16 %v500_v50, %v499_v49  ;;  %v483_v57 = vld [vmem:[#allocation8 + $0x20] sm:$0xff]  ;;  %v484_v58 = vld [vmem:[#allocation8 + $0x28] sm:$0xff]  ;;  %v129_v60 = vld [vmem:[#allocation6 + $0xf8] sm:$0xff]  ;;  %v871_v61 = vpack.c.bf16 %v124_v55, %v122_v52  ;;  %v132_v49 = vlaneseq }
  0x45   :  { %882 = vmatprep.subr.bf16.mxu1 %v881_v46  ;;  %v127_v59 = vld [vmem:[#allocation6 + $0xe8] sm:$0xff]  ;;  %v887_v62 = vpack.c.bf16 %v484_v58, %v483_v57  ;;  %v126_v1 = vld [vmem:[#allocation6 + $0xe0] sm:$0xff]  ;;  %v128_v2 = vld [vmem:[#allocation6 + $0xf0] sm:$0xff] }
  0x46   :  { %v873_v63 = vpack.c.bf16 %v129_v60, %v127_v59  ;;  %v875_v3 = vpack.c.bf16 %v128_v2, %v126_v1  ;;  %v82_v4 = vld [vmem:[#allocation3] sm:$0xff]  ;;  %v83_v5 = vld [vmem:[#allocation3 + $0x8] sm:$0xff]  ;;  %v84_v6 = vld [vmem:[#allocation3 + $0x10] sm:$0xff]  ;;  %v133_v50 = vshrl.u32 %v132_v49, 7 }
  0x47   :  { %860 = vmatpush1.bf16.msra.mxu0 %v859_v26  ;;  %v85_v7 = vld [vmem:[#allocation3 + $0x18] sm:$0xff]  ;;  %v86_v8 = vld [vmem:[#allocation3 + $0x20] sm:$0xff]  ;;  %v87_v9 = vld [vmem:[#allocation3 + $0x28] sm:$0xff] }
  0x48   :  { %862 = vmatprep.subr.bf16.mxu0 %v861_v27  ;;  %884 = vmatpush3.bf16.msra.mxu1 %v883_v53  ;;  %v88_v10 = vld [vmem:[#allocation3 + $0x30] sm:$0xff]  ;;  %v89_v11 = vld [vmem:[#allocation3 + $0x38] sm:$0xff]  ;;  %v90_v12 = vld [vmem:[#allocation3 + $0x40] sm:$0xff]  ;;  %v138_v53 = vsub.s32 1, %v133_v50 }
  0x49   :  { %886 = vmatprep.subr.bf16.mxu1 %v885_v56  ;;  %v91_v13 = vld [vmem:[#allocation3 + $0x48] sm:$0xff]  ;;  %v92_v14 = vld [vmem:[#allocation3 + $0x50] sm:$0xff]  ;;  %v93_v15 = vld [vmem:[#allocation3 + $0x58] sm:$0xff] }
  0x4a   :  { %v94_v16 = vld [vmem:[#allocation3 + $0x60] sm:$0xff]  ;;  %v95_v17 = vld [vmem:[#allocation3 + $0x68] sm:$0xff]  ;;  %v96_v18 = vld [vmem:[#allocation3 + $0x70] sm:$0xff] }
  0x4b   :  { %864 = vmatpush1.bf16.msra.mxu0 %v863_v34  ;;  %v97_v19 = vld [vmem:[#allocation3 + $0x78] sm:$0xff]  ;;  %v501_v20 = vld [vmem:[#allocation8 + $0xb0] sm:$0xff]  ;;  %v503_v26 = vld [vmem:[#allocation8 + $0xc0] sm:$0xff] }
  0x4c   :  { %866 = vmatprep.subr.bf16.mxu0 %v865_v40  ;;  %888 = vmatpush3.bf16.msra.mxu1 %v887_v62  ;;  %v502_v21 = vld [vmem:[#allocation8 + $0xb8] sm:$0xff]  ;;  %v485_v23 = vld [vmem:[#allocation8 + $0x30] sm:$0xff]  ;;  %v504_v27 = vld [vmem:[#allocation8 + $0xc8] sm:$0xff] }
  0x4d   :  { %v889_v22 = vpack.c.bf16 %v502_v21, %v501_v20  ;;  %v486_v24 = vld [vmem:[#allocation8 + $0x38] sm:$0xff]  ;;  %v893_v28 = vpack.c.bf16 %v504_v27, %v503_v26  ;;  %v487_v29 = vld [vmem:[#allocation8 + $0x40] sm:$0xff]  ;;  %v488_v30 = vld [vmem:[#allocation8 + $0x48] sm:$0xff] }
  0x4e   :  { %v891_v25 = vpack.c.bf16 %v486_v24, %v485_v23  ;;  %v895_v31 = vpack.c.bf16 %v488_v30, %v487_v29  ;;  %v505_v32 = vld [vmem:[#allocation8 + $0xd0] sm:$0xff]  ;;  %v490_v35 = vld [vmem:[#allocation8 + $0x58] sm:$0xff]  ;;  %v507_v37 = vld [vmem:[#allocation8 + $0xe0] sm:$0xff] }
  0x4f   :  { %868 = vmatpush1.bf16.msra.mxu0 %v867_v51  ;;  %890 = vmatprep.subr.bf16.mxu1 %v889_v22  ;;  %v489_v34 = vld [vmem:[#allocation8 + $0x50] sm:$0xff]  ;;  %v508_v38 = vld [vmem:[#allocation8 + $0xe8] sm:$0xff]  ;;  %v491_v40 = vld [vmem:[#allocation8 + $0x60] sm:$0xff]  ;;  %v134_v51 = vsub.s32 0, %v133_v50 }
  0x50   :  { %870 = vmatprep.subr.bf16.mxu0 %v869_v54  ;;  %892 = vmatpush3.bf16.msra.mxu1 %v891_v25  ;;  %v899_v36 = vpack.c.bf16 %v490_v35, %v489_v34  ;;  %v901_v39 = vpack.c.bf16 %v508_v38, %v507_v37  ;;  %v492_v41 = vld [vmem:[#allocation8 + $0x68] sm:$0xff]  ;;  %v509_v43 = vld [vmem:[#allocation8 + $0xf0] sm:$0xff]  ;;  %v510_v44 = vld [vmem:[#allocation8 + $0xf8] sm:$0xff] }
  0x51   :  { %894 = vmatprep.subr.bf16.mxu1 %v893_v28  ;;  %v903_v42 = vpack.c.bf16 %v492_v41, %v491_v40  ;;  %v905_v45 = vpack.c.bf16 %v510_v44, %v509_v43  ;;  %v493_v46 = vld [vmem:[#allocation8 + $0x70] sm:$0xff]  ;;  %v494_v47 = vld [vmem:[#allocation8 + $0x78] sm:$0xff]  ;;  %v130_v52 = vld [vmem:[%s1330_s2] sm:$0x3] }
  0x52   :  { %v907_v48 = vpack.c.bf16 %v494_v47, %v493_v46  ;;  %v1176_v54 = vrot.slane %v130_v52, %v134_v51  ;;  %v1178_v55 = vrot.slane %v130_v52, %v138_v53 }
  0x53   :  { %872 = vmatpush1.bf16.msra.mxu0 %v871_v61 }
  0x54   :  { %874 = vmatprep.subr.bf16.mxu0 %v873_v63  ;;  %896 = vmatpush3.bf16.msra.mxu1 %v895_v31 }
  0x57   :  { %876 = vmatpush1.bf16.msra.mxu0 %v875_v3 }
  0x5a   :  { %207 = vmatmul.mubr.f32.vlgmr.msra.gmra.mrb[0].mxu0 %v82_v4 }
  0x5b   :  { %212 = vmatprep.mubr.f32.mxu0 %v1083_v0 }
  0x5e   :  { %213 = vmatmul.mubr.f32.gmra.mrb[2].mxu0 %v83_v5 }
  0x5f   :  { %218 = vmatprep.mubr.f32.mxu0 %v1083_v0 }
  0x62   :  { %219 = vmatmul.mubr.f32.gmra.mrb[4].mxu0 %v84_v6 }
  0x63   :  { %224 = vmatprep.mubr.f32.mxu0 %v1083_v0 }
  0x66   :  { %225 = vmatmul.mubr.f32.gmra.mrb[6].mxu0 %v85_v7 }
  0x67   :  { %230 = vmatprep.mubr.f32.mxu0 %v1083_v0 }
  0x6a   :  { %231 = vmatmul.mubr.f32.gmra.mrb[8].mxu0 %v86_v8 }
  0x6b   :  { %236 = vmatprep.mubr.f32.mxu0 %v1083_v0 }
  0x6e   :  { %237 = vmatmul.mubr.f32.gmra.mrb[10].mxu0 %v87_v9 }
  0x6f   :  { %242 = vmatprep.mubr.f32.mxu0 %v1083_v0 }
  0x72   :  { %243 = vmatmul.mubr.f32.gmra.mrb[12].mxu0 %v88_v10 }
  0x73   :  { %248 = vmatprep.mubr.f32.mxu0 %v1083_v0 }
  0x76   :  { %249 = vmatmul.mubr.f32.gmra.mrb[14].mxu0 %v89_v11 }
  0x77   :  { %254 = vmatprep.mubr.f32.mxu0 %v1083_v0 }
  0x7a   :  { %255 = vmatmul.mubr.f32.gmra.mrb[16].mxu0 %v90_v12 }
  0x7b   :  { %260 = vmatprep.mubr.f32.mxu0 %v1083_v0 }
  0x7e   :  { %261 = vmatmul.mubr.f32.gmra.mrb[18].mxu0 %v91_v13 }
  0x7f   :  { %266 = vmatprep.mubr.f32.mxu0 %v1083_v0 }
  0x82   :  { %267 = vmatmul.mubr.f32.gmra.mrb[20].mxu0 %v92_v14 }
  0x83   :  { %272 = vmatprep.mubr.f32.mxu0 %v1083_v0 }
  0x86   :  { %273 = vmatmul.mubr.f32.gmra.mrb[22].mxu0 %v93_v15 }
  0x87   :  { %278 = vmatprep.mubr.f32.mxu0 %v1083_v0 }
  0x8a   :  { %279 = vmatmul.mubr.f32.gmra.mrb[24].mxu0 %v94_v16 }
  0x8b   :  { %284 = vmatprep.mubr.f32.mxu0 %v1083_v0 }
  0x8e   :  { %285 = vmatmul.mubr.f32.gmra.mrb[26].mxu0 %v95_v17 }
  0x8f   :  { %290 = vmatprep.mubr.f32.mxu0 %v1083_v0 }
  0x92   :  { %291 = vmatmul.mubr.f32.gmra.mrb[28].mxu0 %v96_v18 }
  0x93   :  { %296 = vmatprep.mubr.f32.mxu0 %v1083_v0  ;;  %v506_v0 = vld [vmem:[#allocation8 + $0xd8] sm:$0xff] }
  0x94   :  { %v897_v33 = vpack.c.bf16 %v506_v0, %v505_v32 }
  0x96   :  { %297 = vmatmul.mubr.f32.gmra.mrb[30].mxu0 %v97_v19  ;;  %898 = vmatprep.subr.bf16.mxu1 %v897_v33 }
  0x97   :  { %900 = vmatpush3.bf16.msra.mxu1 %v899_v36 }
  0x98   :  { %902 = vmatprep.subr.bf16.mxu1 %v901_v39 }
  0x9b   :  { %904 = vmatpush3.bf16.msra.mxu1 %v903_v42 }
  0x9c   :  { %906 = vmatprep.subr.bf16.mxu1 %v905_v45 }
  0x9f   :  { %908 = vmatpush3.bf16.msra.mxu1 %v907_v48 }
 0x12d   :  { %v208_v56 = vpop.f32.mrb[0].mxu0 }
 0x12e   :  { %v209_v57 = vadd.f32 %v208_v56, %v1176_v54  ;;  %v210_v58 = vpop.f32.mrb[1].mxu0 }
 0x12f   :  { %v211_v59 = vadd.f32 %v210_v58, %v1178_v55 }
 0x130   :  { %v335_v60 = vmul.f32 0.70710677, %v209_v57  ;;  %v303_v25 = vmul.f32 0.5, %v209_v57 }
 0x131   :  { %v336_v61 = vmul.f32 0.70710677, %v211_v59  ;;  %v214_v62 = vpop.f32.mrb[2].mxu0  ;;  %v304_v23 = vmul.f32 0.5, %v211_v59 }
 0x132   :  { %918 = verf.f32 %v335_v60  ;;  %v215_v63 = vadd.f32 %v214_v62, %v1176_v54  ;;  %v216_v1 = vpop.f32.mrb[3].mxu0 }
 0x133   :  { %920 = verf.f32 %v336_v61  ;;  %v217_v2 = vadd.f32 %v216_v1, %v1178_v55 }
 0x134   :  { %v337_v3 = vmul.f32 0.70710677, %v215_v63  ;;  %v305_v38 = vmul.f32 0.5, %v215_v63 }
 0x135   :  { %v338_v4 = vmul.f32 0.70710677, %v217_v2  ;;  %v220_v5 = vpop.f32.mrb[4].mxu0  ;;  %v306_v34 = vmul.f32 0.5, %v217_v2 }
 0x136   :  { %922 = verf.f32 %v337_v3  ;;  %v221_v6 = vadd.f32 %v220_v5, %v1176_v54  ;;  %v222_v7 = vpop.f32.mrb[5].mxu0 }
 0x137   :  { %924 = verf.f32 %v338_v4  ;;  %v223_v8 = vadd.f32 %v222_v7, %v1178_v55 }
 0x138   :  { %v339_v9 = vmul.f32 0.70710677, %v221_v6  ;;  %v307_v52 = vmul.f32 0.5, %v221_v6 }
 0x139   :  { %v340_v10 = vmul.f32 0.70710677, %v223_v8  ;;  %v226_v11 = vpop.f32.mrb[6].mxu0  ;;  %v308_v48 = vmul.f32 0.5, %v223_v8 }
 0x13a   :  { %926 = verf.f32 %v339_v9  ;;  %v1187_v12 = vadd.f32 %v226_v11, %v1176_v54  ;;  %v228_v13 = vpop.f32.mrb[7].mxu0 }
 0x13b   :  { %928 = verf.f32 %v340_v10  ;;  %v229_v14 = vadd.f32 %v228_v13, %v1178_v55 }
 0x13c   :  { %v919_v15 = vpop.eup %918  ;;  %v341_v16 = vmul.f32 0.70710677, %v1187_v12  ;;  %v309_v5 = vmul.f32 0.5, %v1187_v12 }
 0x13d   :  { %v921_v17 = vpop.eup %920  ;;  %v399_v18 = vadd.f32 1.0, %v919_v15  ;;  %v342_v19 = vmul.f32 0.70710677, %v229_v14  ;;  %v232_v20 = vpop.f32.mrb[8].mxu0  ;;  %v310_v1 = vmul.f32 0.5, %v229_v14 }
 0x13e   :  { %930 = verf.f32 %v341_v16  ;;  %v1192_v21 = vadd.f32 %v232_v20, %v1176_v54  ;;  %v234_v22 = vpop.f32.mrb[9].mxu0  ;;  %v400_v24 = vadd.f32 1.0, %v921_v17 }
 0x13f   :  { %932 = verf.f32 %v342_v19  ;;  %v1195_v26 = vadd.f32 %v234_v22, %v1178_v55  ;;  %v431_v33 = vmul.f32 %v399_v18, %v303_v25 }
 0x140   :  { %v923_v27 = vpop.eup %922  ;;  %v343_v28 = vmul.f32 0.70710677, %v1192_v21  ;;  %v432_v29 = vmul.f32 %v400_v24, %v304_v23  ;;  %v311_v19 = vmul.f32 0.5, %v1192_v21 }
 0x141   :  { %v925_v30 = vpop.eup %924  ;;  %v401_v31 = vadd.f32 1.0, %v923_v27  ;;  %v344_v32 = vmul.f32 0.70710677, %v1195_v26  ;;  %v238_v0 = vpop.f32.mrb[10].mxu0  ;;  %v312_v16 = vmul.f32 0.5, %v1195_v26 }
 0x142   :  { %v402_v35 = vadd.f32 1.0, %v925_v30  ;;  %934 = verf.f32 %v343_v28  ;;  %v1200_v36 = vadd.f32 %v238_v0, %v1176_v54  ;;  %v240_v37 = vpop.f32.mrb[11].mxu0  ;;  %575 = vmatprep.mubr.f32.mxu1 %v432_v29 }
 0x143   :  { %936 = verf.f32 %v344_v32  ;;  %v1203_v39 = vadd.f32 %v240_v37, %v1178_v55  ;;  %576 = vmatmul.mubr.f32.vlgmr.msra.gmra.mrb[0].mxu1 %v431_v33  ;;  %v433_v47 = vmul.f32 %v401_v31, %v305_v38 }
 0x144   :  { %v927_v40 = vpop.eup %926  ;;  %v345_v41 = vmul.f32 0.70710677, %v1200_v36  ;;  %v434_v42 = vmul.f32 %v402_v35, %v306_v34  ;;  %v313_v0 = vmul.f32 0.5, %v1200_v36 }
 0x145   :  { %v929_v43 = vpop.eup %928  ;;  %v403_v44 = vadd.f32 1.0, %v927_v40  ;;  %v346_v45 = vmul.f32 0.70710677, %v1203_v39  ;;  %v244_v46 = vpop.f32.mrb[12].mxu0  ;;  %v314_v30 = vmul.f32 0.5, %v1203_v39 }
 0x146   :  { %v404_v49 = vadd.f32 1.0, %v929_v43  ;;  %938 = verf.f32 %v345_v41  ;;  %v1208_v50 = vadd.f32 %v244_v46, %v1176_v54  ;;  %v246_v51 = vpop.f32.mrb[13].mxu0  ;;  %580 = vmatprep.mubr.f32.mxu1 %v434_v42 }
 0x147   :  { %940 = verf.f32 %v346_v45  ;;  %v1211_v53 = vadd.f32 %v246_v51, %v1178_v55  ;;  %581 = vmatmul.mubr.f32.gmra.mrb[2].mxu1 %v433_v47  ;;  %v435_v63 = vmul.f32 %v403_v44, %v307_v52 }
 0x148   :  { %v931_v56 = vpop.eup %930  ;;  %v347_v57 = vmul.f32 0.70710677, %v1208_v50  ;;  %v436_v58 = vmul.f32 %v404_v49, %v308_v48  ;;  %v315_v46 = vmul.f32 0.5, %v1208_v50 }
 0x149   :  { %v933_v59 = vpop.eup %932  ;;  %v405_v60 = vadd.f32 1.0, %v931_v56  ;;  %v348_v61 = vmul.f32 0.70710677, %v1211_v53  ;;  %v250_v62 = vpop.f32.mrb[14].mxu0  ;;  %v316_v43 = vmul.f32 0.5, %v1211_v53 }
 0x14a   :  { %v406_v2 = vadd.f32 1.0, %v933_v59  ;;  %942 = verf.f32 %v347_v57  ;;  %v1216_v3 = vadd.f32 %v250_v62, %v1176_v54  ;;  %v252_v4 = vpop.f32.mrb[15].mxu0  ;;  %585 = vmatprep.mubr.f32.mxu1 %v436_v58 }
 0x14b   :  { %944 = verf.f32 %v348_v61  ;;  %v1220_v6 = vadd.f32 %v252_v4, %v1178_v55  ;;  %586 = vmatmul.mubr.f32.gmra.mrb[4].mxu1 %v435_v63  ;;  %v437_v15 = vmul.f32 %v405_v60, %v309_v5 }
 0x14c   :  { %v935_v7 = vpop.eup %934  ;;  %v349_v8 = vmul.f32 0.70710677, %v1216_v3  ;;  %v438_v9 = vmul.f32 %v406_v2, %v310_v1  ;;  %v317_v62 = vmul.f32 0.5, %v1216_v3 }
 0x14d   :  { %v937_v10 = vpop.eup %936  ;;  %v407_v11 = vadd.f32 1.0, %v935_v7  ;;  %v350_v13 = vmul.f32 0.70710677, %v1220_v6  ;;  %v256_v14 = vpop.f32.mrb[16].mxu0  ;;  %v318_v59 = vmul.f32 0.5, %v1220_v6 }
 0x14e   :  { %v408_v17 = vadd.f32 1.0, %v937_v10  ;;  %946 = verf.f32 %v349_v8  ;;  %v1226_v12 = vadd.f32 %v256_v14, %v1176_v54  ;;  %v258_v18 = vpop.f32.mrb[17].mxu0  ;;  %590 = vmatprep.mubr.f32.mxu1 %v438_v9 }
 0x14f   :  { %948 = verf.f32 %v350_v13  ;;  %v1230_v20 = vadd.f32 %v258_v18, %v1178_v55  ;;  %591 = vmatmul.mubr.f32.gmra.mrb[6].mxu1 %v437_v15  ;;  %v439_v29 = vmul.f32 %v407_v11, %v311_v19 }
 0x150   :  { %v939_v22 = vpop.eup %938  ;;  %v351_v23 = vmul.f32 0.70710677, %v1226_v12  ;;  %v440_v24 = vmul.f32 %v408_v17, %v312_v16  ;;  %v319_v14 = vmul.f32 0.5, %v1226_v12 }
 0x151   :  { %v941_v25 = vpop.eup %940  ;;  %v409_v26 = vadd.f32 1.0, %v939_v22  ;;  %v352_v27 = vmul.f32 0.70710677, %v1230_v20  ;;  %v262_v28 = vpop.f32.mrb[18].mxu0  ;;  %v320_v10 = vmul.f32 0.5, %v1230_v20 }
 0x152   :  { %v410_v31 = vadd.f32 1.0, %v941_v25  ;;  %950 = verf.f32 %v351_v23  ;;  %v1236_v21 = vadd.f32 %v262_v28, %v1176_v54  ;;  %v264_v32 = vpop.f32.mrb[19].mxu0  ;;  %595 = vmatprep.mubr.f32.mxu1 %v440_v24 }
 0x153   :  { %952 = verf.f32 %v352_v27  ;;  %v1240_v33 = vadd.f32 %v264_v32, %v1178_v55  ;;  %596 = vmatmul.mubr.f32.gmra.mrb[8].mxu1 %v439_v29  ;;  %v441_v42 = vmul.f32 %v409_v26, %v313_v0 }
 0x154   :  { %v943_v34 = vpop.eup %942  ;;  %v353_v35 = vmul.f32 0.70710677, %v1236_v21  ;;  %v442_v37 = vmul.f32 %v410_v31, %v314_v30  ;;  %v321_v28 = vmul.f32 0.5, %v1236_v21 }
 0x155   :  { %v945_v38 = vpop.eup %944  ;;  %v411_v39 = vadd.f32 1.0, %v943_v34  ;;  %v354_v40 = vmul.f32 0.70710677, %v1240_v33  ;;  %v268_v41 = vpop.f32.mrb[20].mxu0  ;;  %v322_v25 = vmul.f32 0.5, %v1240_v33 }
 0x156   :  { %v412_v44 = vadd.f32 1.0, %v945_v38  ;;  %954 = verf.f32 %v353_v35  ;;  %v1246_v36 = vadd.f32 %v268_v41, %v1176_v54  ;;  %v270_v45 = vpop.f32.mrb[21].mxu0  ;;  %600 = vmatprep.mubr.f32.mxu1 %v442_v37 }
 0x157   :  { %956 = verf.f32 %v354_v40  ;;  %v1250_v47 = vadd.f32 %v270_v45, %v1178_v55  ;;  %601 = vmatmul.mubr.f32.gmra.mrb[10].mxu1 %v441_v42  ;;  %v443_v58 = vmul.f32 %v411_v39, %v315_v46 }
 0x158   :  { %v947_v48 = vpop.eup %946  ;;  %v355_v49 = vmul.f32 0.70710677, %v1246_v36  ;;  %v444_v51 = vmul.f32 %v412_v44, %v316_v43  ;;  %v323_v41 = vmul.f32 0.5, %v1246_v36 }
 0x159   :  { %v949_v52 = vpop.eup %948  ;;  %v413_v53 = vadd.f32 1.0, %v947_v48  ;;  %v356_v56 = vmul.f32 0.70710677, %v1250_v47  ;;  %v274_v57 = vpop.f32.mrb[22].mxu0  ;;  %v324_v38 = vmul.f32 0.5, %v1250_v47 }
 0x15a   :  { %v414_v60 = vadd.f32 1.0, %v949_v52  ;;  %958 = verf.f32 %v355_v49  ;;  %v1256_v50 = vadd.f32 %v274_v57, %v1176_v54  ;;  %v276_v61 = vpop.f32.mrb[23].mxu0  ;;  %605 = vmatprep.mubr.f32.mxu1 %v444_v51 }
 0x15b   :  { %960 = verf.f32 %v356_v56  ;;  %v1260_v63 = vadd.f32 %v276_v61, %v1178_v55  ;;  %606 = vmatmul.mubr.f32.gmra.mrb[12].mxu1 %v443_v58  ;;  %v445_v9 = vmul.f32 %v413_v53, %v317_v62 }
 0x15c   :  { %v951_v1 = vpop.eup %950  ;;  %v357_v2 = vmul.f32 0.70710677, %v1256_v50  ;;  %v446_v4 = vmul.f32 %v414_v60, %v318_v59  ;;  %v325_v36 = vmul.f32 0.5, %v1256_v50 }
 0x15d   :  { %v953_v5 = vpop.eup %952  ;;  %v415_v6 = vadd.f32 1.0, %v951_v1  ;;  %v358_v7 = vmul.f32 0.70710677, %v1260_v63  ;;  %v280_v8 = vpop.f32.mrb[24].mxu0  ;;  %v326_v52 = vmul.f32 0.5, %v1260_v63 }
 0x15e   :  { %v416_v11 = vadd.f32 1.0, %v953_v5  ;;  %962 = verf.f32 %v357_v2  ;;  %v1266_v3 = vadd.f32 %v280_v8, %v1176_v54  ;;  %v282_v13 = vpop.f32.mrb[25].mxu0  ;;  %610 = vmatprep.mubr.f32.mxu1 %v446_v4 }
 0x15f   :  { %964 = verf.f32 %v358_v7  ;;  %v1270_v15 = vadd.f32 %v282_v13, %v1178_v55  ;;  %611 = vmatmul.mubr.f32.gmra.mrb[14].mxu1 %v445_v9  ;;  %v447_v24 = vmul.f32 %v415_v6, %v319_v14 }
 0x160   :  { %v955_v16 = vpop.eup %954  ;;  %v359_v17 = vmul.f32 0.70710677, %v1266_v3  ;;  %v448_v18 = vmul.f32 %v416_v11, %v320_v10 }
 0x161   :  { %v957_v19 = vpop.eup %956  ;;  %v417_v20 = vadd.f32 1.0, %v955_v16  ;;  %v360_v22 = vmul.f32 0.70710677, %v1270_v15  ;;  %v286_v23 = vpop.f32.mrb[26].mxu0  ;;  %v328_v63 = vmul.f32 0.5, %v1270_v15 }
 0x162   :  { %v418_v26 = vadd.f32 1.0, %v957_v19  ;;  %966 = verf.f32 %v359_v17  ;;  %v1276_v12 = vadd.f32 %v286_v23, %v1176_v54  ;;  %v288_v27 = vpop.f32.mrb[27].mxu0  ;;  %615 = vmatprep.mubr.f32.mxu1 %v448_v18 }
 0x163   :  { %968 = verf.f32 %v360_v22  ;;  %v289_v29 = vadd.f32 %v288_v27, %v1178_v55  ;;  %616 = vmatmul.mubr.f32.gmra.mrb[16].mxu1 %v447_v24  ;;  %v449_v37 = vmul.f32 %v417_v20, %v321_v28 }
 0x164   :  { %v959_v30 = vpop.eup %958  ;;  %v361_v31 = vmul.f32 0.70710677, %v1276_v12  ;;  %v450_v32 = vmul.f32 %v418_v26, %v322_v25  ;;  %v329_v11 = vmul.f32 0.5, %v1276_v12 }
 0x165   :  { %v961_v0 = vpop.eup %960  ;;  %v419_v34 = vadd.f32 1.0, %v959_v30  ;;  %v362_v33 = vmul.f32 0.70710677, %v289_v29  ;;  %v292_v35 = vpop.f32.mrb[28].mxu0  ;;  %v330_v9 = vmul.f32 0.5, %v289_v29 }
 0x166   :  { %v420_v39 = vadd.f32 1.0, %v961_v0  ;;  %970 = verf.f32 %v361_v31  ;;  %v293_v40 = vadd.f32 %v292_v35, %v1176_v54  ;;  %v294_v21 = vpop.f32.mrb[29].mxu0  ;;  %620 = vmatprep.mubr.f32.mxu1 %v450_v32  ;;  %v1295_v32 = vld [vmem:[%s1332_s4] ss:$0 sm:$0xff]  ;;  %s1084_s4 = smov [#allocation9]  }
 0x167   :  { %972 = verf.f32 %v362_v33  ;;  %v295_v42 = vadd.f32 %v294_v21, %v1178_v55  ;;  %621 = vmatmul.mubr.f32.gmra.mrb[18].mxu1 %v449_v37  ;;  %v451_v47 = vmul.f32 %v419_v34, %v323_v41  ;;  %s751_s8 = sshll.u32 %s1084_s4, 4  ;;  %s752_s8 = int_to_ptr.vmem [resolvable:$true] %s751_s8 }
 0x168   :  { %v963_v43 = vpop.eup %962  ;;  %v363_v44 = vmul.f32 0.70710677, %v293_v40  ;;  %v452_v45 = vmul.f32 %v420_v39, %v324_v38  ;;  %v331_v19 = vmul.f32 0.5, %v293_v40  ;;  %s1048_s9 = scalar_lea.vmem %s752_s8, 2048  ;;  %p1053_p11 = scmp.lt.s32.totalorder %s752_s8, %s752_s8 }
 0x169   :  { %v965_v46 = vpop.eup %964  ;;  %v421_v48 = vadd.f32 1.0, %v963_v43  ;;  %v364_v49 = vmul.f32 0.70710677, %v295_v42  ;;  %v298_v51 = vpop.f32.mrb[30].mxu0  ;;  %v332_v18 = vmul.f32 0.5, %v295_v42  ;;  %p1049_p10 = scmp.ne.s32.totalorder %s752_s8, %s1048_s9  ;;  %p1054_p12 = scmp.lt.s32.totalorder %s1048_s9, %s1048_s9 }
 0x16a   :  { %v422_v53 = vadd.f32 1.0, %v965_v46  ;;  %974 = verf.f32 %v363_v44  ;;  %v299_v56 = vadd.f32 %v298_v51, %v1176_v54  ;;  %v300_v57 = vpop.f32.mrb[31].mxu0  ;;  %625 = vmatprep.mubr.f32.mxu1 %v452_v45  ;;  %v327_v54 = vmul.f32 0.5, %v1266_v3 }
 0x16b   :  { %976 = verf.f32 %v364_v49  ;;  %v301_v58 = vadd.f32 %v300_v57, %v1178_v55  ;;  %626 = vmatmul.mubr.f32.gmra.mrb[20].mxu1 %v451_v47  ;;  %v453_v4 = vmul.f32 %v421_v48, %v325_v36  ;;  %p1055_p13 = por %p1054_p12, %p1053_p11 }
 0x16c   :  { %v967_v59 = vpop.eup %966  ;;  %v365_v60 = vmul.f32 0.70710677, %v299_v56  ;;  %v454_v61 = vmul.f32 %v422_v53, %v326_v52  ;;  %v333_v12 = vmul.f32 0.5, %v299_v56 }
 0x16d   :  { %v969_v62 = vpop.eup %968  ;;  %v423_v1 = vadd.f32 1.0, %v967_v59  ;;  %v366_v2 = vmul.f32 0.70710677, %v301_v58  ;;  %v334_v26 = vmul.f32 0.5, %v301_v58  ;;  %p1056_p0 = pnand %p1055_p13, %p1049_p10 }
 0x16e   :  { %v424_v5 = vadd.f32 1.0, %v969_v62  ;;  %978 = verf.f32 %v365_v60  ;;  %630 = vmatprep.mubr.f32.mxu1 %v454_v61 }
 0x16f   :  { %980 = verf.f32 %v366_v2  ;;  %631 = vmatmul.mubr.f32.gmra.mrb[22].mxu1 %v453_v4  ;;  %v455_v8 = vmul.f32 %v423_v1, %v327_v54 }
 0x170   :  { %v971_v50 = vpop.eup %970  ;;  %v456_v6 = vmul.f32 %v424_v5, %v328_v63 }
 0x171   :  { %v973_v55 = vpop.eup %972  ;;  %v425_v7 = vadd.f32 1.0, %v971_v50 }
 0x172   :  { %v426_v10 = vadd.f32 1.0, %v973_v55  ;;  %635 = vmatprep.mubr.f32.mxu1 %v456_v6 }
 0x173   :  { %636 = vmatmul.mubr.f32.gmra.mrb[24].mxu1 %v455_v8  ;;  %v457_v17 = vmul.f32 %v425_v7, %v329_v11 }
 0x174   :  { %v975_v13 = vpop.eup %974  ;;  %v458_v14 = vmul.f32 %v426_v10, %v330_v9 }
 0x175   :  { %v977_v15 = vpop.eup %976  ;;  %v427_v16 = vadd.f32 1.0, %v975_v13 }
 0x176   :  { %v428_v3 = vadd.f32 1.0, %v977_v15  ;;  %640 = vmatprep.mubr.f32.mxu1 %v458_v14 }
 0x177   :  { %641 = vmatmul.mubr.f32.gmra.mrb[26].mxu1 %v457_v17  ;;  %v459_v25 = vmul.f32 %v427_v16, %v331_v19 }
 0x178   :  { %v979_v20 = vpop.eup %978  ;;  %v460_v22 = vmul.f32 %v428_v3, %v332_v18 }
 0x179   :  { %v981_v23 = vpop.eup %980  ;;  %v429_v24 = vadd.f32 1.0, %v979_v20 }
 0x17a   :  { %v430_v27 = vadd.f32 1.0, %v981_v23  ;;  %645 = vmatprep.mubr.f32.mxu1 %v460_v22 }
 0x17b   :  { %646 = vmatmul.mubr.f32.gmra.mrb[28].mxu1 %v459_v25  ;;  %v461_v29 = vmul.f32 %v429_v24, %v333_v12 }
 0x17c   :  { %v462_v28 = vmul.f32 %v430_v27, %v334_v26 }
 0x17e   :  { %650 = vmatprep.mubr.f32.mxu1 %v462_v28 }
 0x17f   :  { %651 = vmatmul.mubr.f32.gmra.mrb[30].mxu1 %v461_v29 }
 0x216   :  { %v797_v30 = vpop.f32.mrb[0].mxu1 }
 0x217   :  { %v798_v31 = vpop.f32.mrb[1].mxu1 }
 0x218   :  { %v799_v0 = vadd.f32 %v798_v31, %v797_v30 }
 0x21a   :  { %v714_v34 = vadd.f32 %v799_v0, %v1295_v32  ;;  %v800_v33 = vpop.f32.mrb[2].mxu1 }
 0x21b   :  { %v801_v35 = vpop.f32.mrb[3].mxu1 }
 0x21c   :  { %730 = vst [vmem:[#allocation9] sm:$0xff] %v714_v34  ;;  %v802_v37 = vadd.f32 %v801_v35, %v800_v33 }
 0x21e   :  { %v715_v38 = vadd.f32 %v802_v37, %v1295_v32  ;;  %v803_v39 = vpop.f32.mrb[4].mxu1 }
 0x21f   :  { %v804_v40 = vpop.f32.mrb[5].mxu1 }
 0x220   :  { %731 = vst [vmem:[#allocation9 + $0x8] sm:$0xff] %v715_v38  ;;  %v805_v21 = vadd.f32 %v804_v40, %v803_v39 }
 0x222   :  { %v716_v41 = vadd.f32 %v805_v21, %v1295_v32  ;;  %v806_v42 = vpop.f32.mrb[6].mxu1 }
 0x223   :  { %v807_v43 = vpop.f32.mrb[7].mxu1 }
 0x224   :  { %732 = vst [vmem:[#allocation9 + $0x10] sm:$0xff] %v716_v41  ;;  %v808_v44 = vadd.f32 %v807_v43, %v806_v42 }
 0x226   :  { %v717_v45 = vadd.f32 %v808_v44, %v1295_v32  ;;  %v809_v46 = vpop.f32.mrb[8].mxu1 }
 0x227   :  { %v810_v48 = vpop.f32.mrb[9].mxu1 }
 0x228   :  { %733 = vst [vmem:[#allocation9 + $0x18] sm:$0xff] %v717_v45  ;;  %v811_v49 = vadd.f32 %v810_v48, %v809_v46 }
 0x22a   :  { %v718_v51 = vadd.f32 %v811_v49, %v1295_v32  ;;  %v812_v47 = vpop.f32.mrb[10].mxu1 }
 0x22b   :  { %v813_v52 = vpop.f32.mrb[11].mxu1 }
 0x22c   :  { %734 = vst [vmem:[#allocation9 + $0x20] sm:$0xff] %v718_v51  ;;  %v814_v53 = vadd.f32 %v813_v52, %v812_v47 }
 0x22e   :  { %v719_v56 = vadd.f32 %v814_v53, %v1295_v32  ;;  %v815_v57 = vpop.f32.mrb[12].mxu1 }
 0x22f   :  { %v816_v36 = vpop.f32.mrb[13].mxu1 }
 0x230   :  { %735 = vst [vmem:[#allocation9 + $0x28] sm:$0xff] %v719_v56  ;;  %v817_v58 = vadd.f32 %v816_v36, %v815_v57 }
 0x232   :  { %v720_v59 = vadd.f32 %v817_v58, %v1295_v32  ;;  %v818_v60 = vpop.f32.mrb[14].mxu1 }
 0x233   :  { %v819_v61 = vpop.f32.mrb[15].mxu1 }
 0x234   :  { %736 = vst [vmem:[#allocation9 + $0x30] sm:$0xff] %v720_v59  ;;  %v820_v62 = vadd.f32 %v819_v61, %v818_v60 }
 0x236   :  { %v721_v1 = vadd.f32 %v820_v62, %v1295_v32  ;;  %v821_v2 = vpop.f32.mrb[16].mxu1 }
 0x237   :  { %v822_v4 = vpop.f32.mrb[17].mxu1 }
 0x238   :  { %737 = vst [vmem:[#allocation9 + $0x38] sm:$0xff] %v721_v1  ;;  %v823_v63 = vadd.f32 %v822_v4, %v821_v2 }
 0x23a   :  { %v722_v5 = vadd.f32 %v823_v63, %v1295_v32  ;;  %v824_v54 = vpop.f32.mrb[18].mxu1 }
 0x23b   :  { %v825_v50 = vpop.f32.mrb[19].mxu1 }
 0x23c   :  { %738 = vst [vmem:[#allocation9 + $0x40] sm:$0xff] %v722_v5  ;;  %v826_v6 = vadd.f32 %v825_v50, %v824_v54 }
 0x23e   :  { %v723_v55 = vadd.f32 %v826_v6, %v1295_v32  ;;  %v827_v7 = vpop.f32.mrb[20].mxu1 }
 0x23f   :  { %v828_v8 = vpop.f32.mrb[21].mxu1 }
 0x240   :  { %739 = vst [vmem:[#allocation9 + $0x48] sm:$0xff] %v723_v55  ;;  %v829_v9 = vadd.f32 %v828_v8, %v827_v7 }
 0x242   :  { %v724_v10 = vadd.f32 %v829_v9, %v1295_v32  ;;  %v830_v11 = vpop.f32.mrb[22].mxu1 }
 0x243   :  { %v831_v13 = vpop.f32.mrb[23].mxu1 }
 0x244   :  { %740 = vst [vmem:[#allocation9 + $0x50] sm:$0xff] %v724_v10  ;;  %v832_v14 = vadd.f32 %v831_v13, %v830_v11 }
 0x246   :  { %v725_v15 = vadd.f32 %v832_v14, %v1295_v32  ;;  %v833_v16 = vpop.f32.mrb[24].mxu1 }
 0x247   :  { %v834_v17 = vpop.f32.mrb[25].mxu1 }
 0x248   :  { %741 = vst [vmem:[#allocation9 + $0x58] sm:$0xff] %v725_v15  ;;  %v835_v18 = vadd.f32 %v834_v17, %v833_v16 }
 0x24a   :  { %v726_v3 = vadd.f32 %v835_v18, %v1295_v32  ;;  %v836_v19 = vpop.f32.mrb[26].mxu1 }
 0x24b   :  { %v837_v20 = vpop.f32.mrb[27].mxu1 }
 0x24c   :  { %742 = vst [vmem:[#allocation9 + $0x60] sm:$0xff] %v726_v3  ;;  %v838_v22 = vadd.f32 %v837_v20, %v836_v19 }
 0x24e   :  { %v727_v23 = vadd.f32 %v838_v22, %v1295_v32  ;;  %v839_v24 = vpop.f32.mrb[28].mxu1 }
 0x24f   :  { %v840_v25 = vpop.f32.mrb[29].mxu1 }
 0x250   :  { %743 = vst [vmem:[#allocation9 + $0x68] sm:$0xff] %v727_v23  ;;  %v841_v26 = vadd.f32 %v840_v25, %v839_v24 }
 0x252   :  { %v728_v27 = vadd.f32 %v841_v26, %v1295_v32  ;;  %v842_v12 = vpop.f32.mrb[30].mxu1 }
 0x253   :  { %v843_v28 = vpop.f32.mrb[31].mxu1 }
 0x254   :  { %744 = vst [vmem:[#allocation9 + $0x70] sm:$0xff] %v728_v27  ;;  %v844_v29 = vadd.f32 %v843_v28, %v842_v12 }
 0x256   :  { %v729_v30 = vadd.f32 %v844_v29, %v1295_v32 }
 0x258   :  { %745 = vst [vmem:[#allocation9 + $0x78] sm:$0xff] %v729_v30 }
 0x259   :  { %1059 = shalt.err (!%p1056_p0)
}
 0x25a   :  { %s1060_s12 = scalar_lea.hbm %s1333_s5, 2048 }
 0x25b   :  { %p1061_p1 = scmp.ne.s32.totalorder %s1333_s5, %s1060_s12  ;;  %p1064_p2 = scmp.lt.u32.totalorder %s1060_s12, %s1333_s5 }
 0x25d   :  { %p1066_p3 = pnand %p1064_p2, %p1061_p1 }
 0x25f   :  { %1069 = shalt.err (!%p1066_p3)
}
 0x260   :  { %757 = dma.vmem_to_hbm [thread:$0]  %s752_s8, 2048, %s1333_s5, [#allocation5], %s1080_s1, %s1080_s1, %s1081_s17  }
 0x261   :  { %1074 = dma.done.wait [#allocation5], 2048  }
 0x262   :  { %1075 = vsyncadd [#allocation5], 4294965248 }
 0x263   :  { %761 = vsyncpa [#allocation4], 1 }
 0x264   :  { %762 = vsyncpa [#allocation7], 1 }
 0x265   :  { %763 = vsyncpa [#allocation5], 1 }

</bundles_post_ra>
